<compile_context>
chip_gen: v7x
topology: tpu7x:2x2x1
jax: 0.10.0
libtpu: 0.0.40
codegen_flags: <defaults>
</compile_context>

<pallas_src>
import jax
import jax.numpy as jnp
from jax import lax
from jax.experimental import pallas as pl
from jax.experimental.pallas import tpu as pltpu


def _round_up(x, m):
    return ((x + m - 1) // m) * m


def _choose_batch_tile(n, rows_per_image, target_rows=512):
    """Pick a batch tile (divisor of n).

    Keep >= 2 grid steps when the batch allows it (v7x has 2 TensorCores and
    the grid axis is marked "parallel"), then grow the tile toward
    ~target_rows rows of the (rows, C) activation matrix per step to amortize
    the fixed per-grid-step overhead.
    """
    divisors = [d for d in range(1, n + 1) if n % d == 0]
    cands = [d for d in divisors if n // d >= 2] or divisors
    under = [d for d in cands if d * rows_per_image <= target_rows]
    return max(under) if under else min(cands)


# ----------------------------- Pallas kernel --------------------------------

def _make_sepconvhead_kernel(B, H, W, kH, kW):
    """Fused depthwise-conv + pointwise-conv(+BN) + ReLU + 1x1-conv kernel."""

    def kernel(xp_ref, dw_ref, w1_ref, shift_ref, w2_ref, b_ref, o_ref):
        x = xp_ref[...]            # (B, Hp, Wp, Cin) f32, VMEM resident
        dw = dw_ref[...]           # (kH, kW, Cin)
        cin = x.shape[-1]

        # ---- depthwise kH x kW conv (VPU): 9 statically shifted windows ----
        # kh slices are along a non-tiled (major) axis -> free address offsets;
        # kw slices move along the sublane (W) axis -> Mosaic emits sublane
        # shifts.  TODO(synk): generate the kw shifts with pltpu.roll (XLU)
        # instead of sliced copies once sublane-axis roll is validated here.
        acc = None
        for kh in range(kH):
            xh = x[:, kh:kh + H, :, :]
            for kw in range(kW):
                tap = xh[:, :, kw:kw + W, :] * dw[kh, kw, :]
                acc = tap if acc is None else acc + tap

        # (B,H,W,Cin) -> (B*H*W, Cin); free relayout when W % 8 == 0 (f32).
        a = acc.reshape(B * H * W, cin)

        # ---- pointwise 1x1 conv (in -> mid) with BN scale pre-folded, MXU ----
        z = jnp.dot(a.astype(w1_ref.dtype), w1_ref[...],
                    preferred_element_type=jnp.float32)

        # ---- folded BatchNorm shift + ReLU ----
        h = jnp.maximum(z + shift_ref[...], 0.0)

        # ---- final 1x1 conv (mid -> num_outputs) + bias, MXU ----
        y = jnp.dot(h.astype(w2_ref.dtype), w2_ref[...],
                    preferred_element_type=jnp.float32) + b_ref[...]

        o_ref[...] = y.reshape(B, H, W, y.shape[-1]).astype(o_ref.dtype)

    return kernel


# ------------------------------ host wrappers --------------------------------

def prepare_params(params, in_channels, mid_channels, num_outputs, eps=1e-5,
                   matmul_dtype=jnp.float32):
    """Precompute (once) transposed weights, folded BN, and mid-channel pad.

    matmul_dtype: set to jnp.bfloat16 at realistic channel counts for native
    MXU rate (f32 accumulation is kept in-kernel); left f32 here so the toy
    shapes hold a 1e-4 tolerance against the reference.
    """
    CMP = _round_up(max(mid_channels, 1), 128)

    # depthwise weight (Cin, 1, kH, kW) -> (kH, kW, Cin)
    dw = jnp.transpose(params["dw_w"][:, 0, :, :], (1, 2, 0)).astype(jnp.float32)

    # BatchNorm2d (inference) -> per-mid-channel scale / shift; fold the scale
    # directly into the pointwise weight columns.
    inv = params["bn_gamma"] / jnp.sqrt(params["bn_var"] + eps)

    # pointwise weight (Cmid, Cin, 1, 1) -> (Cin, CMP), BN scale folded in
    w1 = jnp.transpose(params["pw_w"][:, :, 0, 0], (1, 0)) * inv[None, :]
    w1 = jnp.pad(w1, ((0, 0), (0, CMP - mid_channels))).astype(matmul_dtype)

    shift = jnp.pad(params["bn_beta"] - params["bn_mean"] * inv,
                    (0, CMP - mid_channels)).reshape(1, CMP).astype(jnp.float32)

    # final 1x1 conv (Cout, Cmid, 1, 1) -> (CMP, Cout); bias -> (1, Cout).
    # Padded mid rows are zero, so the CMP padding never leaks into the output.
    w2 = jnp.transpose(params["out_w"][:, :, 0, 0], (1, 0))
    w2 = jnp.pad(w2, ((0, CMP - mid_channels), (0, 0))).astype(matmul_dtype)
    b2 = params["out_b"].reshape(1, num_outputs).astype(jnp.float32)

    return dict(dw=dw, w1=w1, shift=shift, w2=w2, b2=b2)


def sepconvhead_forward(x_nchw, prepped):
    """SepConvHead forward.  Input/output NCHW (PyTorch convention)."""
    N, Cin, H, W = x_nchw.shape
    dw, w1, shift = prepped["dw"], prepped["w1"], prepped["shift"]
    w2, b2 = prepped["w2"], prepped["b2"]

    kH, kW, _ = dw.shape
    CMP = w1.shape[1]
    Cout = w2.shape[1]
    pad = (kH - 1) // 2
    Hp, Wp = H + 2 * pad, W + 2 * pad

    # NCHW -> NHWC + spatial conv-padding only (no channel padding in HBM).
    x = jnp.transpose(x_nchw, (0, 2, 3, 1)).astype(jnp.float32)
    xp = jnp.pad(x, ((0, 0), (pad, pad), (pad, pad), (0, 0)))

    bt = _choose_batch_tile(N, H * W)
    grid = (N // bt,)

    kernel = _make_sepconvhead_kernel(bt, H, W, kH, kW)
    out = pl.pallas_call(
        kernel,
        out_shape=jax.ShapeDtypeStruct((N, H, W, Cout), jnp.float32),
        grid_spec=pltpu.PrefetchScalarGridSpec(
            num_scalar_prefetch=0,
            grid=grid,
            in_specs=[
                pl.BlockSpec((bt, Hp, Wp, Cin), lambda n: (n, 0, 0, 0)),
                pl.BlockSpec((kH, kW, Cin), lambda n: (0, 0, 0)),
                pl.BlockSpec((Cin, CMP), lambda n: (0, 0)),
                pl.BlockSpec((1, CMP), lambda n: (0, 0)),
                pl.BlockSpec((CMP, Cout), lambda n: (0, 0)),
                pl.BlockSpec((1, Cout), lambda n: (0, 0)),
            ],
            out_specs=pl.BlockSpec((bt, H, W, Cout), lambda n: (n, 0, 0, 0)),
        ),
        compiler_params=pltpu.CompilerParams(
            dimension_semantics=("parallel",)),
    )(xp, dw, w1, shift, w2, b2)

    # compact (N,H,W,Cout) -> NCHW; no padded channels to slice off.
    return jnp.transpose(out, (0, 3, 1, 2))


# ------------------------------- reference -----------------------------------

def _ref_forward(x_nchw, params, eps=1e-5):
    """Pure-JAX reference (lax convolutions, eval-mode BN)."""
    dn = ("NHWC", "HWIO", "NHWC")
    x = jnp.transpose(x_nchw, (0, 2, 3, 1))
    Cin = x.shape[-1]

    dw_hwio = jnp.transpose(params["dw_w"], (2, 3, 1, 0))      # (3,3,1,Cin)
    y = lax.conv_general_dilated(x, dw_hwio, (1, 1), [(1, 1), (1, 1)],
                                 dimension_numbers=dn,
                                 feature_group_count=Cin)

    pw_hwio = jnp.transpose(params["pw_w"], (2, 3, 1, 0))      # (1,1,Cin,Cmid)
    y = lax.conv_general_dilated(y, pw_hwio, (1, 1), [(0, 0), (0, 0)],
                                 dimension_numbers=dn)

    inv = params["bn_gamma"] / jnp.sqrt(params["bn_var"] + eps)
    y = (y - params["bn_mean"]) * inv + params["bn_beta"]
    y = jnp.maximum(y, 0.0)

    out_hwio = jnp.transpose(params["out_w"], (2, 3, 1, 0))    # (1,1,Cmid,Cout)
    y = lax.conv_general_dilated(y, out_hwio, (1, 1), [(0, 0), (0, 0)],
                                 dimension_numbers=dn) + params["out_b"]
    return jnp.transpose(y, (0, 3, 1, 2))


# ---------------------------------- main --------------------------------------

if __name__ == "__main__":
    key = jax.random.PRNGKey(0)
    N, Cin, H, W = 2, 4, 16, 16          # in_channels = 4
    Cmid, Cout = 32, 4                   # mid_channels = 32, num_outputs = 4
    k = 3                                # kernel_size = 3, padding = 1

    keys = jax.random.split(key, 10)
    params = {
        # SeparableConv2d: depthwise (Cin,1,3,3), pointwise (Cmid,Cin,1,1)
        "dw_w": jax.random.normal(keys[0], (Cin, 1, k, k), jnp.float32) * 0.2,
        "pw_w": jax.random.normal(keys[1], (Cmid, Cin, 1, 1), jnp.float32) * 0.2,
        # BatchNorm2d(Cmid) running stats + affine (inference mode)
        "bn_gamma": 1.0 + 0.1 * jax.random.normal(keys[2], (Cmid,), jnp.float32),
        "bn_beta": 0.1 * jax.random.normal(keys[3], (Cmid,), jnp.float32),
        "bn_mean": 0.1 * jax.random.normal(keys[4], (Cmid,), jnp.float32),
        "bn_var": 0.5 + 0.1 * jnp.abs(jax.random.normal(keys[5], (Cmid,), jnp.float32)),
        # final Conv2d(Cmid, Cout, 1) with bias
        "out_w": jax.random.normal(keys[6], (Cout, Cmid, 1, 1), jnp.float32) * 0.2,
        "out_b": jax.random.normal(keys[7], (Cout,), jnp.float32) * 0.2,
    }
    x = jax.random.normal(keys[8], (N, Cin, H, W), jnp.float32)

    # f32 matmuls at these toy channel counts (tolerance); use
    # matmul_dtype=jnp.bfloat16 for realistic channel counts.
    prepped = prepare_params(params, Cin, Cmid, Cout)
    fwd = jax.jit(sepconvhead_forward)

    out = jax.block_until_ready(fwd(x, prepped))
    assert out.shape == (N, Cout, H, W), out.shape

    ref = jax.block_until_ready(_ref_forward(x, params))
    assert jnp.allclose(out, ref, atol=1e-4, rtol=1e-4), \
        float(jnp.max(jnp.abs(out - ref)))

    print("KERNEL_OK")
</pallas_src>

<mosaic_0001>
module attributes {stable_mosaic.version = 11 : i64} {
  func.func @kernel(%arg0: i32, %arg1: memref<1x18x18x4xf32, #tpu.memory_space<vmem>>, %arg2: memref<3x3x4xf32, #tpu.memory_space<vmem>>, %arg3: memref<4x128xf32, #tpu.memory_space<vmem>>, %arg4: memref<1x128xf32, #tpu.memory_space<vmem>>, %arg5: memref<128x4xf32, #tpu.memory_space<vmem>>, %arg6: memref<1x4xf32, #tpu.memory_space<vmem>>, %arg7: memref<1x16x16x4xf32, #tpu.memory_space<vmem>>) attributes {dimension_semantics = [#tpu.dimension_semantics<parallel>], iteration_bounds = array<i64: 2>, scalar_prefetch = 0 : i64, scratch_operands = 0 : i64, tpu.core_type = #tpu.core_type<tc>, window_params = [{transform_indices = @transform_0, window_bounds = array<i64: 1, 18, 18, 4>}, {pipeline_mode = #tpu.pipeline_mode<synchronous>, transform_indices = @transform_1, window_bounds = array<i64: 3, 3, 4>}, {pipeline_mode = #tpu.pipeline_mode<synchronous>, transform_indices = @transform_2, window_bounds = array<i64: 4, 128>}, {pipeline_mode = #tpu.pipeline_mode<synchronous>, transform_indices = @transform_3, window_bounds = array<i64: 1, 128>}, {pipeline_mode = #tpu.pipeline_mode<synchronous>, transform_indices = @transform_4, window_bounds = array<i64: 128, 4>}, {pipeline_mode = #tpu.pipeline_mode<synchronous>, transform_indices = @transform_5, window_bounds = array<i64: 1, 4>}, {transform_indices = @transform_6, window_bounds = array<i64: 1, 16, 16, 4>}]} {
    %c0 = arith.constant 0 : index
    %c0_0 = arith.constant 0 : index
    %c0_1 = arith.constant 0 : index
    %c0_2 = arith.constant 0 : index
    %0 = vector.load %arg1[%c0, %c0_0, %c0_1, %c0_2] : memref<1x18x18x4xf32, #tpu.memory_space<vmem>>, vector<1x18x18x4xf32>
    %c0_3 = arith.constant 0 : index
    %c0_4 = arith.constant 0 : index
    %c0_5 = arith.constant 0 : index
    %1 = vector.load %arg2[%c0_3, %c0_4, %c0_5] : memref<3x3x4xf32, #tpu.memory_space<vmem>>, vector<3x3x4xf32>
    %2 = vector.extract_strided_slice %0 {offsets = [0, 0, 0, 0], sizes = [1, 16, 18, 4], strides = [1, 1, 1, 1]} : vector<1x18x18x4xf32> to vector<1x16x18x4xf32>
    %3 = vector.extract_strided_slice %2 {offsets = [0, 0, 0, 0], sizes = [1, 16, 16, 4], strides = [1, 1, 1, 1]} : vector<1x16x18x4xf32> to vector<1x16x16x4xf32>
    %4 = vector.extract_strided_slice %1 {offsets = [0, 0, 0], sizes = [1, 1, 4], strides = [1, 1, 1]} : vector<3x3x4xf32> to vector<1x1x4xf32>
    %5 = vector.shape_cast %4 : vector<1x1x4xf32> to vector<4xf32>
    %6 = vector.shape_cast %5 : vector<4xf32> to vector<1x1x1x4xf32>
    %7 = vector.broadcast %6 : vector<1x1x1x4xf32> to vector<1x16x16x4xf32>
    %8 = arith.mulf %3, %7 : vector<1x16x16x4xf32>
    %9 = vector.extract_strided_slice %2 {offsets = [0, 0, 1, 0], sizes = [1, 16, 16, 4], strides = [1, 1, 1, 1]} : vector<1x16x18x4xf32> to vector<1x16x16x4xf32>
    %10 = vector.extract_strided_slice %1 {offsets = [0, 1, 0], sizes = [1, 1, 4], strides = [1, 1, 1]} : vector<3x3x4xf32> to vector<1x1x4xf32>
    %11 = vector.shape_cast %10 : vector<1x1x4xf32> to vector<4xf32>
    %12 = vector.shape_cast %11 : vector<4xf32> to vector<1x1x1x4xf32>
    %13 = vector.broadcast %12 : vector<1x1x1x4xf32> to vector<1x16x16x4xf32>
    %14 = arith.mulf %9, %13 : vector<1x16x16x4xf32>
    %15 = arith.addf %8, %14 : vector<1x16x16x4xf32>
    %16 = vector.extract_strided_slice %2 {offsets = [0, 0, 2, 0], sizes = [1, 16, 16, 4], strides = [1, 1, 1, 1]} : vector<1x16x18x4xf32> to vector<1x16x16x4xf32>
    %17 = vector.extract_strided_slice %1 {offsets = [0, 2, 0], sizes = [1, 1, 4], strides = [1, 1, 1]} : vector<3x3x4xf32> to vector<1x1x4xf32>
    %18 = vector.shape_cast %17 : vector<1x1x4xf32> to vector<4xf32>
    %19 = vector.shape_cast %18 : vector<4xf32> to vector<1x1x1x4xf32>
    %20 = vector.broadcast %19 : vector<1x1x1x4xf32> to vector<1x16x16x4xf32>
    %21 = arith.mulf %16, %20 : vector<1x16x16x4xf32>
    %22 = arith.addf %15, %21 : vector<1x16x16x4xf32>
    %23 = vector.extract_strided_slice %0 {offsets = [0, 1, 0, 0], sizes = [1, 16, 18, 4], strides = [1, 1, 1, 1]} : vector<1x18x18x4xf32> to vector<1x16x18x4xf32>
    %24 = vector.extract_strided_slice %23 {offsets = [0, 0, 0, 0], sizes = [1, 16, 16, 4], strides = [1, 1, 1, 1]} : vector<1x16x18x4xf32> to vector<1x16x16x4xf32>
    %25 = vector.extract_strided_slice %1 {offsets = [1, 0, 0], sizes = [1, 1, 4], strides = [1, 1, 1]} : vector<3x3x4xf32> to vector<1x1x4xf32>
    %26 = vector.shape_cast %25 : vector<1x1x4xf32> to vector<4xf32>
    %27 = vector.shape_cast %26 : vector<4xf32> to vector<1x1x1x4xf32>
    %28 = vector.broadcast %27 : vector<1x1x1x4xf32> to vector<1x16x16x4xf32>
    %29 = arith.mulf %24, %28 : vector<1x16x16x4xf32>
    %30 = arith.addf %22, %29 : vector<1x16x16x4xf32>
    %31 = vector.extract_strided_slice %23 {offsets = [0, 0, 1, 0], sizes = [1, 16, 16, 4], strides = [1, 1, 1, 1]} : vector<1x16x18x4xf32> to vector<1x16x16x4xf32>
    %32 = vector.extract_strided_slice %1 {offsets = [1, 1, 0], sizes = [1, 1, 4], strides = [1, 1, 1]} : vector<3x3x4xf32> to vector<1x1x4xf32>
    %33 = vector.shape_cast %32 : vector<1x1x4xf32> to vector<4xf32>
    %34 = vector.shape_cast %33 : vector<4xf32> to vector<1x1x1x4xf32>
    %35 = vector.broadcast %34 : vector<1x1x1x4xf32> to vector<1x16x16x4xf32>
    %36 = arith.mulf %31, %35 : vector<1x16x16x4xf32>
    %37 = arith.addf %30, %36 : vector<1x16x16x4xf32>
    %38 = vector.extract_strided_slice %23 {offsets = [0, 0, 2, 0], sizes = [1, 16, 16, 4], strides = [1, 1, 1, 1]} : vector<1x16x18x4xf32> to vector<1x16x16x4xf32>
    %39 = vector.extract_strided_slice %1 {offsets = [1, 2, 0], sizes = [1, 1, 4], strides = [1, 1, 1]} : vector<3x3x4xf32> to vector<1x1x4xf32>
    %40 = vector.shape_cast %39 : vector<1x1x4xf32> to vector<4xf32>
    %41 = vector.shape_cast %40 : vector<4xf32> to vector<1x1x1x4xf32>
    %42 = vector.broadcast %41 : vector<1x1x1x4xf32> to vector<1x16x16x4xf32>
    %43 = arith.mulf %38, %42 : vector<1x16x16x4xf32>
    %44 = arith.addf %37, %43 : vector<1x16x16x4xf32>
    %45 = vector.extract_strided_slice %0 {offsets = [0, 2, 0, 0], sizes = [1, 16, 18, 4], strides = [1, 1, 1, 1]} : vector<1x18x18x4xf32> to vector<1x16x18x4xf32>
    %46 = vector.extract_strided_slice %45 {offsets = [0, 0, 0, 0], sizes = [1, 16, 16, 4], strides = [1, 1, 1, 1]} : vector<1x16x18x4xf32> to vector<1x16x16x4xf32>
    %47 = vector.extract_strided_slice %1 {offsets = [2, 0, 0], sizes = [1, 1, 4], strides = [1, 1, 1]} : vector<3x3x4xf32> to vector<1x1x4xf32>
    %48 = vector.shape_cast %47 : vector<1x1x4xf32> to vector<4xf32>
    %49 = vector.shape_cast %48 : vector<4xf32> to vector<1x1x1x4xf32>
    %50 = vector.broadcast %49 : vector<1x1x1x4xf32> to vector<1x16x16x4xf32>
    %51 = arith.mulf %46, %50 : vector<1x16x16x4xf32>
    %52 = arith.addf %44, %51 : vector<1x16x16x4xf32>
    %53 = vector.extract_strided_slice %45 {offsets = [0, 0, 1, 0], sizes = [1, 16, 16, 4], strides = [1, 1, 1, 1]} : vector<1x16x18x4xf32> to vector<1x16x16x4xf32>
    %54 = vector.extract_strided_slice %1 {offsets = [2, 1, 0], sizes = [1, 1, 4], strides = [1, 1, 1]} : vector<3x3x4xf32> to vector<1x1x4xf32>
    %55 = vector.shape_cast %54 : vector<1x1x4xf32> to vector<4xf32>
    %56 = vector.shape_cast %55 : vector<4xf32> to vector<1x1x1x4xf32>
    %57 = vector.broadcast %56 : vector<1x1x1x4xf32> to vector<1x16x16x4xf32>
    %58 = arith.mulf %53, %57 : vector<1x16x16x4xf32>
    %59 = arith.addf %52, %58 : vector<1x16x16x4xf32>
    %60 = vector.extract_strided_slice %45 {offsets = [0, 0, 2, 0], sizes = [1, 16, 16, 4], strides = [1, 1, 1, 1]} : vector<1x16x18x4xf32> to vector<1x16x16x4xf32>
    %61 = vector.extract_strided_slice %1 {offsets = [2, 2, 0], sizes = [1, 1, 4], strides = [1, 1, 1]} : vector<3x3x4xf32> to vector<1x1x4xf32>
    %62 = vector.shape_cast %61 : vector<1x1x4xf32> to vector<4xf32>
    %63 = vector.shape_cast %62 : vector<4xf32> to vector<1x1x1x4xf32>
    %64 = vector.broadcast %63 : vector<1x1x1x4xf32> to vector<1x16x16x4xf32>
    %65 = arith.mulf %60, %64 : vector<1x16x16x4xf32>
    %66 = arith.addf %59, %65 : vector<1x16x16x4xf32>
    %67 = vector.shape_cast %66 : vector<1x16x16x4xf32> to vector<256x4xf32>
    %c0_6 = arith.constant 0 : index
    %c0_7 = arith.constant 0 : index
    %68 = vector.load %arg3[%c0_6, %c0_7] : memref<4x128xf32, #tpu.memory_space<vmem>>, vector<4x128xf32>
    %cst = arith.constant dense<0.000000e+00> : vector<256x128xf32>
    %69 = tpu.matmul %67, %68, %cst {dimension_numbers = #tpu.dot_dimension_numbers<[1], [0], [0], [1], [0, 0, 1, 1], [], []>} : vector<256x4xf32>, vector<4x128xf32>, vector<256x128xf32> -> vector<256x128xf32>
    %c0_8 = arith.constant 0 : index
    %c0_9 = arith.constant 0 : index
    %70 = vector.load %arg4[%c0_8, %c0_9] : memref<1x128xf32, #tpu.memory_space<vmem>>, vector<1x128xf32>
    %71 = vector.broadcast %70 : vector<1x128xf32> to vector<256x128xf32>
    %72 = arith.addf %69, %71 : vector<256x128xf32>
    %cst_10 = arith.constant 0.000000e+00 : f32
    %73 = vector.broadcast %cst_10 : f32 to vector<256x128xf32>
    %74 = arith.maximumf %72, %73 : vector<256x128xf32>
    %c0_11 = arith.constant 0 : index
    %c0_12 = arith.constant 0 : index
    %75 = vector.load %arg5[%c0_11, %c0_12] : memref<128x4xf32, #tpu.memory_space<vmem>>, vector<128x4xf32>
    %cst_13 = arith.constant dense<0.000000e+00> : vector<256x4xf32>
    %76 = tpu.matmul %74, %75, %cst_13 {dimension_numbers = #tpu.dot_dimension_numbers<[1], [0], [0], [1], [0, 0, 1, 1], [], []>} : vector<256x128xf32>, vector<128x4xf32>, vector<256x4xf32> -> vector<256x4xf32>
    %c0_14 = arith.constant 0 : index
    %c0_15 = arith.constant 0 : index
    %77 = vector.load %arg6[%c0_14, %c0_15] : memref<1x4xf32, #tpu.memory_space<vmem>>, vector<1x4xf32>
    %78 = vector.broadcast %77 : vector<1x4xf32> to vector<256x4xf32>
    %79 = arith.addf %76, %78 : vector<256x4xf32>
    %80 = vector.shape_cast %79 : vector<256x4xf32> to vector<1x16x16x4xf32>
    %c0_16 = arith.constant 0 : index
    %c0_17 = arith.constant 0 : index
    %c0_18 = arith.constant 0 : index
    %c0_19 = arith.constant 0 : index
    %81 = vector.load %arg7[%c0_16, %c0_17, %c0_18, %c0_19] : memref<1x16x16x4xf32, #tpu.memory_space<vmem>>, vector<1x16x16x4xf32>
    tpu.vector_store %arg7[%c0_16, %c0_17, %c0_18, %c0_19], %80 {strides = array<i32>} : memref<1x16x16x4xf32, #tpu.memory_space<vmem>>, vector<1x16x16x4xf32>,
    return
  }
  func.func @transform_0(%arg0: i32) -> (i32, i32, i32, i32) {
    %c0_i32 = arith.constant 0 : i32
    %c0_i32_0 = arith.constant 0 : i32
    %c0_i32_1 = arith.constant 0 : i32
    %c0_i32_2 = arith.constant 0 : i32
    return %arg0, %c0_i32, %c0_i32_0, %c0_i32_1 : i32, i32, i32, i32
  }
  func.func @transform_1(%arg0: i32) -> (i32, i32, i32) {
    %c0_i32 = arith.constant 0 : i32
    %c0_i32_0 = arith.constant 0 : i32
    %c0_i32_1 = arith.constant 0 : i32
    %c0_i32_2 = arith.constant 0 : i32
    return %c0_i32, %c0_i32_0, %c0_i32_1 : i32, i32, i32
  }
  func.func @transform_2(%arg0: i32) -> (i32, i32) {
    %c0_i32 = arith.constant 0 : i32
    %c0_i32_0 = arith.constant 0 : i32
    %c0_i32_1 = arith.constant 0 : i32
    return %c0_i32, %c0_i32_0 : i32, i32
  }
  func.func @transform_3(%arg0: i32) -> (i32, i32) {
    %c0_i32 = arith.constant 0 : i32
    %c0_i32_0 = arith.constant 0 : i32
    %c0_i32_1 = arith.constant 0 : i32
    return %c0_i32, %c0_i32_0 : i32, i32
  }
  func.func @transform_4(%arg0: i32) -> (i32, i32) {
    %c0_i32 = arith.constant 0 : i32
    %c0_i32_0 = arith.constant 0 : i32
    %c0_i32_1 = arith.constant 0 : i32
    return %c0_i32, %c0_i32_0 : i32, i32
  }
  func.func @transform_5(%arg0: i32) -> (i32, i32) {
    %c0_i32 = arith.constant 0 : i32
    %c0_i32_0 = arith.constant 0 : i32
    %c0_i32_1 = arith.constant 0 : i32
    return %c0_i32, %c0_i32_0 : i32, i32
  }
  func.func @transform_6(%arg0: i32) -> (i32, i32, i32, i32) {
    %c0_i32 = arith.constant 0 : i32
    %c0_i32_0 = arith.constant 0 : i32
    %c0_i32_1 = arith.constant 0 : i32
    %c0_i32_2 = arith.constant 0 : i32
    return %arg0, %c0_i32, %c0_i32_0, %c0_i32_1 : i32, i32, i32, i32
  }
}

</mosaic_0001>

<bundles_post_ra>
// kernel: sepconvhead_forward.1
= control target key start
LH: loop header
LB: loop body
LE: loop exit
PB: predicated region body
PF: predicated region fallthrough
CT: control target
= control target key end

     0   :  { %s3005_s21 = smov 0   ;;  %s4504_s0 = inlined_call_operand.vmem [shape: f32[2,18,18,4], index: 0, kind: input, shape index: {}]   ;;  %s4505_s1 = inlined_call_operand.vmem [shape: f32[3,3,4], index: 1, kind: input, shape index: {}]   ;;  %s4506_s2 = inlined_call_operand.vmem [shape: f32[4,128], index: 2, kind: input, shape index: {}]   ;;  %s4507_s3 = inlined_call_operand.vmem [shape: f32[1,128], index: 3, kind: input, shape index: {}]   ;;  %s4508_s4 = inlined_call_operand.vmem [shape: f32[128,4], index: 4, kind: input, shape index: {}]   ;;  %s4509_s5 = inlined_call_operand.vmem [shape: f32[1,4], index: 5, kind: input, shape index: {}]   ;;  %s4510_s6 = inlined_call_operand.vmem [shape: f32[2,16,16,4], index: 6, kind: output, shape index: {}]  }
   0x1 LB: > { %s2648_s22 = sadd.s32 4294967295, %s2968_s21   ;;  %p2652_p0 = scmp.ge.s32.totalorder %s2968_s21, 1  ;;  %s2968_s21 = sphi %s3005_s21, %s16_s21  }
   0x2   : > { %p212_p1 = scmp.lt.s32.totalorder %s2968_s21, 3 }
   0x4   : > { %p213_p2 = pnand %p2652_p0, %p212_p1 }
   0x5   : > { %v1947_v0 = vld [vmem:[%s4506_s2] sm:$0xf] (!%p213_p2)  ;;  %vm2052_vm0 = vcmask (!%p213_p2), 1043456   ;;  %p242_p3 = scmp.lt.s32.totalorder (!%p213_p2), %s2648_s22, 1  ;;  %v309_v1 = vlaneseq (!%p213_p2)  ;;  %v307_v4 = vld [vmem:[%s4505_s1 + $0x4] sm:$0x7] (!%p213_p2) }
   0x6   : > { %216 = sbr.rel (%p213_p2) target bundleno = 743 (0x2e7), region = 44  ;;  %2775 = vmatprep.subr.msk.mxu0 (!%p213_p2), %vm2052_vm0, %v1947_v0  ;;  %v306_v3 = vld [vmem:[%s4505_s1] sm:$0x7] (!%p213_p2)  ;;  %v308_v5 = vld [vmem:[%s4505_s1 + $0x8] sm:$0x7] (!%p213_p2)  ;;  %vm445_vm1 = vcmask (!%p213_p2), 1046528  }
   0x7   : > { %2776 = vmatpush3.msk.msra.mxu0 (!%p213_p2), %vm2052_vm0, %v1947_v0  ;;  %v310_v2 = vshrl.u32 (!%p213_p2), %v309_v1, 7  ;;  %vm690_vm2 = vcmask (!%p213_p2), 1045504   ;;  %vm1955_vm3 = vcmask (!%p213_p2), 31744  }
   0x9   : > { %v311_v6 = vsub.s32 (!%p213_p2), 0, %v310_v2  ;;  %v347_v7 = vsub.s32 (!%p213_p2), 1, %v310_v2  ;;  %v592_v8 = vsub.s32 (!%p213_p2), 2, %v310_v2 }
   0xb   : > { %v3033_v9 = vrot.slane (!%p213_p2), %v306_v3, %v311_v6  ;;  %v3035_v10 = vrot.slane (!%p213_p2), %v306_v3, %v347_v7  ;;  %v3037_v11 = vrot.slane (!%p213_p2), %v306_v3, %v592_v8  ;;  %v3041_v14 = vrot.slane (!%p213_p2), %v307_v4, %v311_v6 }
   0xc   : > { %v3043_v15 = vrot.slane (!%p213_p2), %v307_v4, %v347_v7  ;;  %v3045_v16 = vrot.slane (!%p213_p2), %v307_v4, %v592_v8  ;;  %v3047_v17 = vrot.slane (!%p213_p2), %v308_v5, %v311_v6  ;;  %v3058_v23 = vrot.slane (!%p213_p2), %v308_v5, %v347_v7 }
   0xd   : > { %s4512_s22 = smov (!%p242_p3, %s2648_s22), 1  ;;  %v3088_v50 = vrot.slane %v308_v5, %v592_v8 }
   0xe   : > { %s2953_s29 = smul.u32 432, %s4512_s22  ;;  %s2693_s25 = sshll.u32 %s4512_s22, 8 }
   0xf   : > { %s4403_s30 = scalar_lea.vmem %s4510_s6, %s2693_s25 }
  0x10   : > { %s3031_s10 = scalar_lea.vmem %s4504_s0, %s2953_s29 }
  0x11   : > { %v252_v12 = vld [vmem:[%s3031_s10] sm:$0xff]  ;;  %v253_v13 = vld [vmem:[%s3031_s10 + $0x8] sm:$0xff]  ;;  %v3050_v18 = vld [vmem:[%s3031_s10 + $0x18] sm:$0xff] }
  0x12   : > { %v3053_v19 = vld [vmem:[%s3031_s10 + $0x20] sm:$0xff]  ;;  %v349_v20 = vmul.f32 %v3035_v10, %v252_v12  ;;  %v350_v21 = vmul.f32 %v3035_v10, %v253_v13  ;;  %v594_v22 = vmul.f32 %v3037_v11, %v252_v12  ;;  %v313_v24 = vmul.f32 %v3033_v9, %v252_v12  ;;  %v3069_v32 = vld [vmem:[%s3031_s10 + $0x30] sm:$0xff]  ;;  %v3080_v42 = vld [vmem:[%s3031_s10 + $0x38] sm:$0xff] }
  0x13   : > { %v595_v25 = vmul.f32 %v3037_v11, %v253_v13  ;;  %v907_v26 = vmul.f32 %v3043_v15, %v3050_v18  ;;  %v908_v27 = vmul.f32 %v3043_v15, %v3053_v19  ;;  %v1151_v31 = vmul.f32 %v3045_v16, %v3050_v18  ;;  %v254_v41 = vld [vmem:[%s3031_s10 + $0x10] sm:$0x3]  ;;  %v3099_v59 = vld [vmem:[%s3031_s10 + $0x28] sm:$0x3] }
  0x14   : > { %v446_v28 = vrot.slane %v349_v20, 1  ;;  %v447_v29 = vrot.slane %v350_v21, 1  ;;  %v691_v30 = vrot.slane %v594_v22, 2  ;;  %v1152_v36 = vmul.f32 %v3045_v16, %v3053_v19 }
  0x15   : > { %v692_v33 = vrot.slane %v595_v25, 2  ;;  %v1003_v34 = vrot.slane %v907_v26, 1  ;;  %v1004_v35 = vrot.slane %v908_v27, 1  ;;  %v839_v38 = vmul.f32 %v3041_v14, %v3050_v18 }
  0x16   : > { %v448_v37 = vsel %vm445_vm1, %v446_v28, %v447_v29  ;;  %v1247_v39 = vrot.slane %v1151_v31, 2  ;;  %v1463_v40 = vmul.f32 %v3058_v23, %v3069_v32  ;;  %v1248_v45 = vrot.slane %v1152_v36, 2 }
  0x17   : > { %v558_v43 = vadd.f32 %v448_v37, %v313_v24  ;;  %v693_v44 = vsel %vm690_vm2, %v691_v30, %v692_v33  ;;  %v1395_v46 = vmul.f32 %v3047_v17, %v3069_v32  ;;  %v1005_v47 = vsel %vm445_vm1, %v1003_v34, %v1004_v35 }
  0x18   : > { %v1464_v48 = vmul.f32 %v3058_v23, %v3080_v42  ;;  %v1559_v49 = vrot.slane %v1463_v40, 1  ;;  %v314_v52 = vmul.f32 %v3033_v9, %v253_v13  ;;  %v351_v53 = vmul.f32 %v3035_v10, %v254_v41  ;;  %v3112_v13 = vld [vmem:[%s3031_s10 + $0x40] sm:$0x3] }
  0x19   : > { %v803_v51 = vadd.f32 %v693_v44, %v558_v43  ;;  %v596_v54 = vmul.f32 %v3037_v11, %v254_v41  ;;  %v1249_v55 = vsel %vm690_vm2, %v1247_v39, %v1248_v45  ;;  %v1707_v57 = vmul.f32 %v3088_v50, %v3069_v32 }
  0x1a   : > { %v1560_v56 = vrot.slane %v1464_v48, 1  ;;  %v1708_v58 = vmul.f32 %v3088_v50, %v3080_v42  ;;  %v449_v61 = vrot.slane %v351_v53, 1  ;;  %v909_v63 = vmul.f32 %v3043_v15, %v3099_v59 }
  0x1b   : > { %v871_v60 = vadd.f32 %v839_v38, %v803_v51  ;;  %v694_v62 = vrot.slane %v596_v54, 2  ;;  %v1803_v0 = vrot.slane %v1707_v57, 2  ;;  %v840_v2 = vmul.f32 %v3041_v14, %v3053_v19 }
  0x1c   : > { %v1804_v1 = vrot.slane %v1708_v58, 2  ;;  %v1153_v3 = vmul.f32 %v3045_v16, %v3099_v59  ;;  %v450_v5 = vsel %vm445_vm1, %v447_v29, %v449_v61  ;;  %v1006_v7 = vrot.slane %v909_v63, 1  ;;  %v3152_v58 = vld [vmem:[%s3031_s10 + $0x48] sm:$0xff] }
  0x1d   : > { %v1115_v4 = vadd.f32 %v1005_v47, %v871_v60  ;;  %v695_v6 = vsel %vm690_vm2, %v692_v33, %v694_v62  ;;  %v1561_v8 = vsel %vm445_vm1, %v1559_v49, %v1560_v56  ;;  %v559_v20 = vadd.f32 %v450_v5, %v314_v52 }
  0x1e   : > { %v1805_v12 = vsel %vm690_vm2, %v1803_v0, %v1804_v1  ;;  %v1250_v21 = vrot.slane %v1153_v3, 2  ;;  %v1396_v24 = vmul.f32 %v3047_v17, %v3080_v42  ;;  %v1465_v25 = vmul.f32 %v3058_v23, %v3112_v13  ;;  %v3157_v0 = vld [vmem:[%s3031_s10 + $0x50] sm:$0xff] }
  0x1f   : > { %v1359_v22 = vadd.f32 %v1249_v55, %v1115_v4  ;;  %v1709_v26 = vmul.f32 %v3088_v50, %v3112_v13  ;;  %v804_v27 = vadd.f32 %v695_v6, %v559_v20  ;;  %v1007_v28 = vsel %vm445_vm1, %v1004_v35, %v1006_v7 }
  0x20   : > { %v1251_v29 = vsel %vm690_vm2, %v1248_v45, %v1250_v21  ;;  %v352_v30 = vmul.f32 %v3035_v10, %v3050_v18  ;;  %v1562_v33 = vrot.slane %v1465_v25, 1  ;;  %v315_v34 = vmul.f32 %v3033_v9, %v3050_v18 }
  0x21   : > { %v1427_v31 = vadd.f32 %v1395_v46, %v1359_v22  ;;  %v3128_v36 = vmul.f32 %v3035_v10, %v3053_v19  ;;  %v872_v37 = vadd.f32 %v840_v2, %v804_v27  ;;  %v597_v39 = vmul.f32 %v3037_v11, %v3050_v18 }
  0x22   : > { %v451_v38 = vrot.slane %v352_v30, 1  ;;  %v3134_v35 = vmul.f32 %v3037_v11, %v3053_v19  ;;  %v1563_v41 = vsel %vm445_vm1, %v1560_v56, %v1562_v33  ;;  %v1806_v43 = vrot.slane %v1709_v26, 2 }
  0x23   : > { %v1671_v40 = vadd.f32 %v1561_v8, %v1427_v31  ;;  %v452_v44 = vrot.slane %v3128_v36, 1  ;;  %v1116_v45 = vadd.f32 %v1007_v28, %v872_v37  ;;  %v696_v46 = vrot.slane %v597_v39, 2 }
  0x24   : > { %v697_v47 = vrot.slane %v3134_v35, 2  ;;  %v841_v48 = vmul.f32 %v3041_v14, %v3069_v32  ;;  %v910_v51 = vmul.f32 %v3043_v15, %v3069_v32  ;;  %v911_v52 = vmul.f32 %v3043_v15, %v3080_v42 }
  0x25   : > { %v1915_v18 = vadd.f32 %v1805_v12, %v1671_v40  ;;  %v453_v49 = vsel %vm445_vm1, %v451_v38, %v452_v44  ;;  %v1360_v53 = vadd.f32 %v1251_v29, %v1116_v45  ;;  %v1154_v56 = vmul.f32 %v3045_v16, %v3069_v32  ;;  %v3188_v38 = vld [vmem:[%s3031_s10 + $0x58] sm:$0x3] }
  0x26   : > { %v560_v54 = vadd.f32 %v453_v49, %v315_v34  ;;  %v698_v55 = vsel %vm690_vm2, %v696_v46, %v697_v47  ;;  %v1807_v57 = vsel %vm690_vm2, %v1804_v1, %v1806_v43  ;;  %v1008_v60 = vrot.slane %v910_v51, 1 }
  0x27   : > { %2777 = vmatprep.mubr.msk.f32.mxu0 %vm1955_vm3, %v1915_v18  ;;  %v1009_v61 = vrot.slane %v911_v52, 1  ;;  %v1155_v62 = vmul.f32 %v3045_v16, %v3080_v42  ;;  %v1428_v63 = vadd.f32 %v1396_v24, %v1360_v53  ;;  %v1252_v3 = vrot.slane %v1154_v56, 2 }
  0x28   : > { %v805_v2 = vadd.f32 %v698_v55, %v560_v54  ;;  %v1466_v4 = vmul.f32 %v3058_v23, %v3152_v58  ;;  %v3164_v1 = vmul.f32 %v3058_v23, %v3157_v0  ;;  %v1710_v7 = vmul.f32 %v3088_v50, %v3152_v58 }
  0x29   : > { %v1010_v5 = vsel %vm445_vm1, %v1008_v60, %v1009_v61  ;;  %v1253_v6 = vrot.slane %v1155_v62, 2  ;;  %v1672_v8 = vadd.f32 %v1563_v41, %v1428_v63  ;;  %v3170_v21 = vmul.f32 %v3088_v50, %v3157_v0 }
  0x2a   : > { %v873_v12 = vadd.f32 %v841_v48, %v805_v2  ;;  %v1564_v20 = vrot.slane %v1466_v4, 1  ;;  %v1397_v24 = vmul.f32 %v3047_v17, %v3152_v58  ;;  %v1565_v25 = vrot.slane %v3164_v1, 1 }
  0x2b   : > { %v1254_v22 = vsel %vm690_vm2, %v1252_v3, %v1253_v6  ;;  %v1916_v26 = vadd.f32 %v1807_v57, %v1672_v8  ;;  %v1808_v28 = vrot.slane %v1710_v7, 2  ;;  %v354_v29 = vmul.f32 %v3035_v10, %v3099_v59 }
  0x2c   : > { %v1117_v27 = vadd.f32 %v1010_v5, %v873_v12  ;;  %v1809_v30 = vrot.slane %v3170_v21, 2  ;;  %v316_v31 = vmul.f32 %v3033_v9, %v3053_v19  ;;  %v599_v33 = vmul.f32 %v3037_v11, %v3099_v59 }
  0x2d   : > { %v912_v34 = vmul.f32 %v3043_v15, %v3112_v13  ;;  %2778 = vmatmul.mubr.msk.f32.vlgmr.msra.gmra.mrb[0].mxu0 %vm1955_vm3, %v1916_v26  ;;  %v1566_v37 = vsel %vm445_vm1, %v1564_v20, %v1565_v25  ;;  %v454_v39 = vrot.slane %v354_v29, 1  ;;  %v1156_v35 = vmul.f32 %v3045_v16, %v3112_v13 }
  0x2e   : > { %v1361_v36 = vadd.f32 %v1254_v22, %v1117_v27  ;;  %v699_v40 = vrot.slane %v599_v33, 2  ;;  %v842_v19 = vmul.f32 %v3041_v14, %v3080_v42  ;;  %v1468_v59 = vmul.f32 %v3058_v23, %v3188_v38  ;;  %v3230_v33 = vld [vmem:[%s3031_s10 + $0x60] sm:$0xff] }
  0x2f   : > { %v1011_v41 = vrot.slane %v912_v34, 1  ;;  %v455_v45 = vsel %vm445_vm1, %v452_v44, %v454_v39  ;;  %v1255_v46 = vrot.slane %v1156_v35, 2  ;;  %v1712_v48 = vmul.f32 %v3088_v50, %v3188_v38  ;;  %v3233_v34 = vld [vmem:[%s3031_s10 + $0x68] sm:$0xff] }
  0x30   : > { %v1429_v43 = vadd.f32 %v1397_v24, %v1361_v36  ;;  %v1810_v18 = vsel %vm690_vm2, %v1808_v28, %v1809_v30  ;;  %v561_v49 = vadd.f32 %v455_v45, %v316_v31  ;;  %v700_v51 = vsel %vm690_vm2, %v697_v47, %v699_v40 }
  0x31   : > { %v1398_v52 = vmul.f32 %v3047_v17, %v3157_v0  ;;  %v1012_v54 = vsel %vm445_vm1, %v1009_v61, %v1011_v41  ;;  %v1256_v55 = vsel %vm690_vm2, %v1253_v6, %v1255_v46  ;;  %v1567_v56 = vrot.slane %v1468_v59, 1 }
  0x32   : > { %v1673_v53 = vadd.f32 %v1566_v37, %v1429_v43  ;;  %v806_v57 = vadd.f32 %v700_v51, %v561_v49  ;;  %v1811_v44 = vrot.slane %v1712_v48, 2  ;;  %v355_v60 = vmul.f32 %v3035_v10, %v3069_v32 }
  0x33   : > { %v356_v62 = vmul.f32 %v3035_v10, %v3080_v42  ;;  %v317_v47 = vmul.f32 %v3033_v9, %v3069_v32  ;;  %v600_v2 = vmul.f32 %v3037_v11, %v3069_v32  ;;  %v601_v61 = vmul.f32 %v3037_v11, %v3080_v42 }
  0x34   : > { %v1917_v63 = vadd.f32 %v1810_v18, %v1673_v53  ;;  %v874_v3 = vadd.f32 %v842_v19, %v806_v57  ;;  %v456_v4 = vrot.slane %v355_v60, 1  ;;  %v843_v6 = vmul.f32 %v3041_v14, %v3152_v58 }
  0x35   : > { %v457_v5 = vrot.slane %v356_v62, 1  ;;  %v701_v1 = vrot.slane %v600_v2, 2  ;;  %v702_v7 = vrot.slane %v601_v61, 2  ;;  %v913_v8 = vmul.f32 %v3043_v15, %v3152_v58 }
  0x36   : > { %2780 = vmatprep.mubr.msk.f32.mxu0 %vm1955_vm3, %v1917_v63  ;;  %v914_v32 = vmul.f32 %v3043_v15, %v3157_v0  ;;  %v1118_v12 = vadd.f32 %v1012_v54, %v874_v3  ;;  %v1157_v21 = vmul.f32 %v3045_v16, %v3152_v58  ;;  %v1158_v22 = vmul.f32 %v3045_v16, %v3157_v0 }
  0x37   : > { %v458_v20 = vsel %vm445_vm1, %v456_v4, %v457_v5  ;;  %v703_v26 = vsel %vm690_vm2, %v701_v1, %v702_v7  ;;  %v1013_v27 = vrot.slane %v913_v8, 1  ;;  %v1568_v31 = vsel %vm445_vm1, %v1565_v25, %v1567_v56 }
  0x38   : > { %v562_v24 = vadd.f32 %v458_v20, %v317_v47  ;;  %v1014_v28 = vrot.slane %v914_v32, 1  ;;  %v1362_v29 = vadd.f32 %v1256_v55, %v1118_v12  ;;  %v1257_v36 = vrot.slane %v1157_v21, 2  ;;  %v3261_v47 = vld [vmem:[%s3031_s10 + $0x70] sm:$0x3] }
  0x39   : > { %v1258_v37 = vrot.slane %v1158_v22, 2  ;;  %v1812_v39 = vsel %vm690_vm2, %v1809_v30, %v1811_v44  ;;  %v1469_v40 = vmul.f32 %v3058_v23, %v3230_v33  ;;  %v1470_v19 = vmul.f32 %v3058_v23, %v3233_v34 }
  0x3a   : > { %v807_v35 = vadd.f32 %v703_v26, %v562_v24  ;;  %v1430_v41 = vadd.f32 %v1398_v52, %v1362_v29  ;;  %v1015_v59 = vsel %vm445_vm1, %v1013_v27, %v1014_v28  ;;  %v1713_v25 = vmul.f32 %v3088_v50, %v3230_v33 }
  0x3b   : > { %v3245_v43 = vmul.f32 %v3088_v50, %v3233_v34  ;;  %v1399_v30 = vmul.f32 %v3047_v17, %v3230_v33  ;;  %v1569_v46 = vrot.slane %v1469_v40, 1  ;;  %v1570_v48 = vrot.slane %v1470_v19, 1 }
  0x3c   : > { %v875_v45 = vadd.f32 %v843_v6, %v807_v35  ;;  %v1674_v18 = vadd.f32 %v1568_v31, %v1430_v41  ;;  %v1259_v49 = vsel %vm690_vm2, %v1257_v36, %v1258_v37  ;;  %v318_v51 = vmul.f32 %v3033_v9, %v3080_v42 }
  0x3d   : > { %v357_v52 = vmul.f32 %v3035_v10, %v3112_v13  ;;  %v1813_v54 = vrot.slane %v1713_v25, 2  ;;  %v1814_v55 = vrot.slane %v3245_v43, 2  ;;  %v602_v56 = vmul.f32 %v3037_v11, %v3112_v13 }
  0x3e   : > { %v1119_v53 = vadd.f32 %v1015_v59, %v875_v45  ;;  %v1918_v57 = vadd.f32 %v1812_v39, %v1674_v18  ;;  %v1571_v44 = vsel %vm445_vm1, %v1569_v46, %v1570_v48  ;;  %v915_v62 = vmul.f32 %v3043_v15, %v3188_v38 }
  0x3f   : > { %v459_v60 = vrot.slane %v357_v52, 1  ;;  %v704_v42 = vrot.slane %v602_v56, 2  ;;  %v844_v2 = vmul.f32 %v3041_v14, %v3157_v0  ;;  %v1159_v61 = vmul.f32 %v3045_v16, %v3188_v38  ;;  %v3303_v52 = vld [vmem:[%s3031_s10 + $0x78] sm:$0xff] }
  0x40   : > { %v1363_v63 = vadd.f32 %v1259_v49, %v1119_v53  ;;  %2781 = vmatmul.mubr.msk.f32.gmra.mrb[2].mxu0 %vm1955_vm3, %v1918_v57  ;;  %v1016_v3 = vrot.slane %v915_v62, 1  ;;  %v1471_v4 = vmul.f32 %v3058_v23, %v3261_v47  ;;  %v1715_v6 = vmul.f32 %v3088_v50, %v3261_v47  ;;  %v3306_v53 = vld [vmem:[%s3031_s10 + $0x80] sm:$0xff] }
  0x41   : > { %v460_v13 = vsel %vm445_vm1, %v457_v5, %v459_v60  ;;  %v705_v32 = vsel %vm690_vm2, %v702_v7, %v704_v42  ;;  %v1260_v12 = vrot.slane %v1159_v61, 2  ;;  %v1815_v20 = vsel %vm690_vm2, %v1813_v54, %v1814_v55 }
  0x42   : > { %v1431_v1 = vadd.f32 %v1399_v30, %v1363_v63  ;;  %v563_v8 = vadd.f32 %v460_v13, %v318_v51  ;;  %v1017_v21 = vsel %vm445_vm1, %v1014_v28, %v1016_v3  ;;  %v1400_v22 = vmul.f32 %v3047_v17, %v3233_v34 }
  0x43   : > { %v1572_v5 = vrot.slane %v1471_v4, 1  ;;  %v1816_v27 = vrot.slane %v1715_v6, 2  ;;  %v358_v29 = vmul.f32 %v3035_v10, %v3152_v58  ;;  %v1261_v31 = vsel %vm690_vm2, %v1258_v37, %v1260_v12 }
  0x44   : > { %v1675_v24 = vadd.f32 %v1571_v44, %v1431_v1  ;;  %v808_v26 = vadd.f32 %v705_v32, %v563_v8  ;;  %v319_v7 = vmul.f32 %v3033_v9, %v3152_v58  ;;  %v359_v36 = vmul.f32 %v3035_v10, %v3157_v0 }
  0x45   : > { %v603_v28 = vmul.f32 %v3037_v11, %v3152_v58  ;;  %v461_v40 = vrot.slane %v358_v29, 1  ;;  %v604_v19 = vmul.f32 %v3037_v11, %v3157_v0  ;;  %v1573_v41 = vsel %vm445_vm1, %v1570_v48, %v1572_v5 }
  0x46   : > { %v1919_v39 = vadd.f32 %v1815_v20, %v1675_v24  ;;  %v876_v35 = vadd.f32 %v844_v2, %v808_v26  ;;  %v462_v37 = vrot.slane %v359_v36, 1  ;;  %v916_v25 = vmul.f32 %v3043_v15, %v3230_v33 }
  0x47   : > { %v706_v59 = vrot.slane %v603_v28, 2  ;;  %v707_v45 = vrot.slane %v604_v19, 2  ;;  %v917_v58 = vmul.f32 %v3043_v15, %v3233_v34  ;;  %v1160_v30 = vmul.f32 %v3045_v16, %v3230_v33 }
  0x48   : > { %2783 = vmatprep.mubr.msk.f32.mxu0 %vm1955_vm3, %v1919_v39  ;;  %v1120_v43 = vadd.f32 %v1017_v21, %v876_v35  ;;  %v463_v46 = vsel %vm445_vm1, %v461_v40, %v462_v37  ;;  %v845_v48 = vmul.f32 %v3041_v14, %v3230_v33  ;;  %v1018_v18 = vrot.slane %v916_v25, 1 }
  0x49   : > { %v1161_v49 = vmul.f32 %v3045_v16, %v3233_v34  ;;  %v564_v54 = vadd.f32 %v463_v46, %v319_v7  ;;  %v708_v56 = vsel %vm690_vm2, %v706_v59, %v707_v45  ;;  %v1019_v57 = vrot.slane %v917_v58, 1  ;;  %v3340_v7 = vld [vmem:[%s3031_s10 + $0x88] sm:$0x3] }
  0x4a   : > { %v1364_v51 = vadd.f32 %v1261_v31, %v1120_v43  ;;  %v1262_v44 = vrot.slane %v1160_v30, 2  ;;  %v1472_v62 = vmul.f32 %v3058_v23, %v3303_v52  ;;  %v3313_v63 = vmul.f32 %v3058_v23, %v3306_v53 }
  0x4b   : > { %v1263_v60 = vrot.slane %v1161_v49, 2  ;;  %v1817_v2 = vsel %vm690_vm2, %v1814_v55, %v1816_v27  ;;  %v809_v61 = vadd.f32 %v708_v56, %v564_v54  ;;  %v1716_v13 = vmul.f32 %v3088_v50, %v3303_v52 }
  0x4c   : > { %v1432_v42 = vadd.f32 %v1400_v22, %v1364_v51  ;;  %v1020_v3 = vsel %vm445_vm1, %v1018_v18, %v1019_v57  ;;  %v1574_v4 = vrot.slane %v1472_v62, 1  ;;  %v1575_v6 = vrot.slane %v3313_v63, 1 }
  0x4d   : > { %v3322_v1 = vmul.f32 %v3088_v50, %v3306_v53  ;;  %v877_v32 = vadd.f32 %v845_v48, %v809_v61  ;;  %v1264_v12 = vsel %vm690_vm2, %v1262_v44, %v1263_v60  ;;  %v1401_v55 = vmul.f32 %v3047_v17, %v3303_v52 }
  0x4e   : > { %v1676_v8 = vadd.f32 %v1573_v41, %v1432_v42  ;;  %v1818_v20 = vrot.slane %v1716_v13, 2  ;;  %v320_v21 = vmul.f32 %v3033_v9, %v3157_v0  ;;  %v360_v22 = vmul.f32 %v3035_v10, %v3188_v38 }
  0x4f   : > { %v605_v5 = vmul.f32 %v3037_v11, %v3188_v38  ;;  %v1121_v26 = vadd.f32 %v1020_v3, %v877_v32  ;;  %v1819_v27 = vrot.slane %v3322_v1, 2  ;;  %v918_v29 = vmul.f32 %v3043_v15, %v3261_v47 }
  0x50   : > { %v1920_v24 = vadd.f32 %v1817_v2, %v1676_v8  ;;  %v1576_v31 = vsel %vm445_vm1, %v1574_v4, %v1575_v6  ;;  %v464_v0 = vrot.slane %v360_v22, 1  ;;  %v1162_v28 = vmul.f32 %v3045_v16, %v3261_v47 }
  0x51   : > { %v709_v36 = vrot.slane %v605_v5, 2  ;;  %v1365_v38 = vadd.f32 %v1264_v12, %v1121_v26  ;;  %v846_v39 = vmul.f32 %v3041_v14, %v3233_v34  ;;  %v1021_v35 = vrot.slane %v918_v29, 1  ;;  %v3385_v29 = vld [vmem:[%s3031_s10 + $0x90] sm:$0xff] }
  0x52   : > { %2784 = vmatmul.mubr.msk.f32.gmra.mrb[4].mxu0 %vm1955_vm3, %v1920_v24  ;;  %v1474_v40 = vmul.f32 %v3058_v23, %v3340_v7  ;;  %v465_v19 = vsel %vm445_vm1, %v462_v37, %v464_v0  ;;  %v1265_v59 = vrot.slane %v1162_v28, 2  ;;  %v1718_v25 = vmul.f32 %v3088_v50, %v3340_v7 }
  0x53   : > { %v710_v41 = vsel %vm690_vm2, %v707_v45, %v709_v36  ;;  %v1433_v43 = vadd.f32 %v1401_v55, %v1365_v38  ;;  %v1820_v58 = vsel %vm690_vm2, %v1818_v20, %v1819_v27  ;;  %v565_v30 = vadd.f32 %v465_v19, %v320_v21 }
  0x54   : > { %v1402_v46 = vmul.f32 %v3047_v17, %v3306_v53  ;;  %v1022_v48 = vsel %vm445_vm1, %v1019_v57, %v1021_v35  ;;  %v1266_v18 = vsel %vm690_vm2, %v1263_v60, %v1265_v59  ;;  %v1577_v49 = vrot.slane %v1474_v40, 1 }
  0x55   : > { %v361_v37 = vmul.f32 %v3035_v10, %v3230_v33  ;;  %v1677_v45 = vadd.f32 %v1576_v31, %v1433_v43  ;;  %v810_v51 = vadd.f32 %v710_v41, %v565_v30  ;;  %v1821_v54 = vrot.slane %v1718_v25, 2  ;;  %v3388_v31 = vld [vmem:[%s3031_s10 + $0x98] sm:$0xff] }
  0x56   : > { %v362_v56 = vmul.f32 %v3035_v10, %v3233_v34  ;;  %v321_v44 = vmul.f32 %v3033_v9, %v3230_v33  ;;  %v606_v42 = vmul.f32 %v3037_v11, %v3230_v33  ;;  %v607_v57 = vmul.f32 %v3037_v11, %v3233_v34 }
  0x57   : > { %v466_v62 = vrot.slane %v361_v37, 1  ;;  %v1921_v60 = vadd.f32 %v1820_v58, %v1677_v45  ;;  %v878_v2 = vadd.f32 %v846_v39, %v810_v51  ;;  %v847_v13 = vmul.f32 %v3041_v14, %v3303_v52 }
  0x58   : > { %v467_v61 = vrot.slane %v362_v56, 1  ;;  %v711_v3 = vrot.slane %v606_v42, 2  ;;  %v712_v4 = vrot.slane %v607_v57, 2  ;;  %v919_v1 = vmul.f32 %v3043_v15, %v3303_v52 }
  0x59   : > { %v920_v8 = vmul.f32 %v3043_v15, %v3306_v53  ;;  %2786 = vmatprep.mubr.msk.f32.mxu0 %vm1955_vm3, %v1921_v60  ;;  %v1122_v33 = vadd.f32 %v1022_v48, %v878_v2  ;;  %v1163_v12 = vmul.f32 %v3045_v16, %v3303_v52  ;;  %v1164_v55 = vmul.f32 %v3045_v16, %v3306_v53 }
  0x5a   : > { %v468_v32 = vsel %vm445_vm1, %v466_v62, %v467_v61  ;;  %v713_v21 = vsel %vm690_vm2, %v711_v3, %v712_v4  ;;  %v1023_v22 = vrot.slane %v919_v1, 1  ;;  %v1578_v26 = vsel %vm445_vm1, %v1575_v6, %v1577_v49  ;;  %v3416_v62 = vld [vmem:[%s3031_s10 + $0xa0] sm:$0x3] }
  0x5b   : > { %v566_v20 = vadd.f32 %v468_v32, %v321_v44  ;;  %v1024_v5 = vrot.slane %v920_v8, 1  ;;  %v1366_v24 = vadd.f32 %v1266_v18, %v1122_v33  ;;  %v1267_v0 = vrot.slane %v1163_v12, 2 }
  0x5c   : > { %v1268_v36 = vrot.slane %v1164_v55, 2  ;;  %v1822_v28 = vsel %vm690_vm2, %v1819_v27, %v1821_v54  ;;  %v1475_v39 = vmul.f32 %v3058_v23, %v3385_v29  ;;  %v1476_v35 = vmul.f32 %v3058_v23, %v3388_v31 }
  0x5d   : > { %v811_v38 = vadd.f32 %v713_v21, %v566_v20  ;;  %v1434_v40 = vadd.f32 %v1402_v46, %v1366_v24  ;;  %v1025_v63 = vsel %vm445_vm1, %v1023_v22, %v1024_v5  ;;  %v1719_v6 = vmul.f32 %v3088_v50, %v3385_v29 }
  0x5e   : > { %v3400_v19 = vmul.f32 %v3088_v50, %v3388_v31  ;;  %v1403_v27 = vmul.f32 %v3047_v17, %v3385_v29  ;;  %v1579_v59 = vrot.slane %v1475_v39, 1  ;;  %v1580_v25 = vrot.slane %v1476_v35, 1 }
  0x5f   : > { %v879_v41 = vadd.f32 %v847_v13, %v811_v38  ;;  %v1678_v43 = vadd.f32 %v1578_v26, %v1434_v40  ;;  %v1269_v58 = vsel %vm690_vm2, %v1267_v0, %v1268_v36  ;;  %v322_v30 = vmul.f32 %v3033_v9, %v3233_v34 }
  0x60   : > { %v363_v46 = vmul.f32 %v3035_v10, %v3261_v47  ;;  %v1823_v18 = vrot.slane %v1719_v6, 2  ;;  %v1824_v49 = vrot.slane %v3400_v19, 2  ;;  %v608_v37 = vmul.f32 %v3037_v11, %v3261_v47 }
  0x61   : > { %v1123_v48 = vadd.f32 %v1025_v63, %v879_v41  ;;  %v1922_v45 = vadd.f32 %v1822_v28, %v1678_v43  ;;  %v1581_v51 = vsel %vm445_vm1, %v1579_v59, %v1580_v25  ;;  %v921_v56 = vmul.f32 %v3043_v15, %v3340_v7 }
  0x62   : > { %v469_v54 = vrot.slane %v363_v46, 1  ;;  %v714_v34 = vrot.slane %v608_v37, 2  ;;  %v848_v42 = vmul.f32 %v3041_v14, %v3306_v53  ;;  %v1165_v57 = vmul.f32 %v3045_v16, %v3340_v7  ;;  %v3458_v46 = vld [vmem:[%s3031_s10 + $0xa8] sm:$0xff] }
  0x63   : > { %v1367_v44 = vadd.f32 %v1269_v58, %v1123_v48  ;;  %2787 = vmatmul.mubr.msk.f32.gmra.mrb[6].mxu0 %vm1955_vm3, %v1922_v45  ;;  %v1026_v60 = vrot.slane %v921_v56, 1  ;;  %v1477_v2 = vmul.f32 %v3058_v23, %v3416_v62  ;;  %v1721_v13 = vmul.f32 %v3088_v50, %v3416_v62  ;;  %v3461_v48 = vld [vmem:[%s3031_s10 + $0xb0] sm:$0xff] }
  0x64   : > { %v470_v47 = vsel %vm445_vm1, %v467_v61, %v469_v54  ;;  %v715_v8 = vsel %vm690_vm2, %v712_v4, %v714_v34  ;;  %v1270_v33 = vrot.slane %v1165_v57, 2  ;;  %v1825_v32 = vsel %vm690_vm2, %v1823_v18, %v1824_v49 }
  0x65   : > { %v1435_v3 = vadd.f32 %v1403_v27, %v1367_v44  ;;  %v567_v1 = vadd.f32 %v470_v47, %v322_v30  ;;  %v1027_v12 = vsel %vm445_vm1, %v1024_v5, %v1026_v60  ;;  %v1404_v55 = vmul.f32 %v3047_v17, %v3388_v31 }
  0x66   : > { %v1582_v61 = vrot.slane %v1477_v2, 1  ;;  %v1826_v22 = vrot.slane %v1721_v13, 2  ;;  %v364_v24 = vmul.f32 %v3035_v10, %v3303_v52  ;;  %v1271_v26 = vsel %vm690_vm2, %v1268_v36, %v1270_v33 }
  0x67   : > { %v1679_v20 = vadd.f32 %v1581_v51, %v1435_v3  ;;  %v812_v21 = vadd.f32 %v715_v8, %v567_v1  ;;  %v323_v4 = vmul.f32 %v3033_v9, %v3303_v52  ;;  %v365_v0 = vmul.f32 %v3035_v10, %v3306_v53 }
  0x68   : > { %v609_v5 = vmul.f32 %v3037_v11, %v3303_v52  ;;  %v471_v39 = vrot.slane %v364_v24, 1  ;;  %v610_v35 = vmul.f32 %v3037_v11, %v3306_v53  ;;  %v1583_v40 = vsel %vm445_vm1, %v1580_v25, %v1582_v61 }
  0x69   : > { %v1923_v28 = vadd.f32 %v1825_v32, %v1679_v20  ;;  %v880_v38 = vadd.f32 %v848_v42, %v812_v21  ;;  %v472_v36 = vrot.slane %v365_v0, 1  ;;  %v922_v6 = vmul.f32 %v3043_v15, %v3385_v29 }
  0x6a   : > { %v716_v63 = vrot.slane %v609_v5, 2  ;;  %v717_v41 = vrot.slane %v610_v35, 2  ;;  %v923_v52 = vmul.f32 %v3043_v15, %v3388_v31  ;;  %v1166_v27 = vmul.f32 %v3045_v16, %v3385_v29 }
  0x6b   : > { %2789 = vmatprep.mubr.msk.f32.mxu0 %vm1955_vm3, %v1923_v28  ;;  %v1124_v19 = vadd.f32 %v1027_v12, %v880_v38  ;;  %v473_v59 = vsel %vm445_vm1, %v471_v39, %v472_v36  ;;  %v849_v25 = vmul.f32 %v3041_v14, %v3385_v29  ;;  %v1028_v43 = vrot.slane %v922_v6, 1 }
  0x6c   : > { %v1167_v58 = vmul.f32 %v3045_v16, %v3388_v31  ;;  %v568_v18 = vadd.f32 %v473_v59, %v323_v4  ;;  %v718_v37 = vsel %vm690_vm2, %v716_v63, %v717_v41  ;;  %v1029_v45 = vrot.slane %v923_v52, 1  ;;  %v3495_v4 = vld [vmem:[%s3031_s10 + $0xb8] sm:$0x3] }
  0x6d   : > { %v1368_v30 = vadd.f32 %v1271_v26, %v1124_v19  ;;  %v1272_v51 = vrot.slane %v1166_v27, 2  ;;  %v1478_v56 = vmul.f32 %v3058_v23, %v3458_v46  ;;  %v3468_v44 = vmul.f32 %v3058_v23, %v3461_v48 }
  0x6e   : > { %v1273_v54 = vrot.slane %v1167_v58, 2  ;;  %v1827_v42 = vsel %vm690_vm2, %v1824_v49, %v1826_v22  ;;  %v813_v57 = vadd.f32 %v718_v37, %v568_v18  ;;  %v1722_v47 = vmul.f32 %v3088_v50, %v3458_v46 }
  0x6f   : > { %v1436_v34 = vadd.f32 %v1404_v55, %v1368_v30  ;;  %v1030_v60 = vsel %vm445_vm1, %v1028_v43, %v1029_v45  ;;  %v1584_v2 = vrot.slane %v1478_v56, 1  ;;  %v1585_v13 = vrot.slane %v3468_v44, 1 }
  0x70   : > { %v3477_v3 = vmul.f32 %v3088_v50, %v3461_v48  ;;  %v881_v8 = vadd.f32 %v849_v25, %v813_v57  ;;  %v1274_v33 = vsel %vm690_vm2, %v1272_v51, %v1273_v54  ;;  %v1405_v49 = vmul.f32 %v3047_v17, %v3458_v46 }
  0x71   : > { %v1680_v1 = vadd.f32 %v1583_v40, %v1436_v34  ;;  %v1828_v32 = vrot.slane %v1722_v47, 2  ;;  %v324_v12 = vmul.f32 %v3033_v9, %v3306_v53  ;;  %v366_v55 = vmul.f32 %v3035_v10, %v3340_v7 }
  0x72   : > { %v611_v61 = vmul.f32 %v3037_v11, %v3340_v7  ;;  %v1125_v21 = vadd.f32 %v1030_v60, %v881_v8  ;;  %v1829_v22 = vrot.slane %v3477_v3, 2  ;;  %v924_v24 = vmul.f32 %v3043_v15, %v3416_v62 }
  0x73   : > { %v1924_v20 = vadd.f32 %v1827_v42, %v1680_v1  ;;  %v1586_v26 = vsel %vm445_vm1, %v1584_v2, %v1585_v13  ;;  %v474_v53 = vrot.slane %v366_v55, 1  ;;  %v1168_v5 = vmul.f32 %v3045_v16, %v3416_v62 }
  0x74   : > { %v719_v0 = vrot.slane %v611_v61, 2  ;;  %v1369_v7 = vadd.f32 %v1274_v33, %v1125_v21  ;;  %v850_v28 = vmul.f32 %v3041_v14, %v3388_v31  ;;  %v1031_v38 = vrot.slane %v924_v24, 1  ;;  %v3540_v24 = vld [vmem:[%s3031_s10 + $0xc0] sm:$0xff] }
  0x75   : > { %2790 = vmatmul.mubr.msk.f32.gmra.mrb[8].mxu0 %vm1955_vm3, %v1924_v20  ;;  %v1480_v39 = vmul.f32 %v3058_v23, %v3495_v4  ;;  %v475_v35 = vsel %vm445_vm1, %v472_v36, %v474_v53  ;;  %v1275_v63 = vrot.slane %v1168_v5, 2  ;;  %v1724_v6 = vmul.f32 %v3088_v50, %v3495_v4 }
  0x76   : > { %v720_v40 = vsel %vm690_vm2, %v717_v41, %v719_v0  ;;  %v1437_v19 = vadd.f32 %v1405_v49, %v1369_v7  ;;  %v1830_v52 = vsel %vm690_vm2, %v1828_v32, %v1829_v22  ;;  %v569_v27 = vadd.f32 %v475_v35, %v324_v12 }
  0x77   : > { %v1406_v59 = vmul.f32 %v3047_v17, %v3461_v48  ;;  %v1032_v25 = vsel %vm445_vm1, %v1029_v45, %v1031_v38  ;;  %v1276_v43 = vsel %vm690_vm2, %v1273_v54, %v1275_v63  ;;  %v1587_v58 = vrot.slane %v1480_v39, 1 }
  0x78   : > { %v367_v36 = vmul.f32 %v3035_v10, %v3385_v29  ;;  %v1681_v41 = vadd.f32 %v1586_v26, %v1437_v19  ;;  %v814_v30 = vadd.f32 %v720_v40, %v569_v27  ;;  %v1831_v18 = vrot.slane %v1724_v6, 2  ;;  %v3543_v26 = vld [vmem:[%s3031_s10 + $0xc8] sm:$0xff] }
  0x79   : > { %v368_v37 = vmul.f32 %v3035_v10, %v3388_v31  ;;  %v325_v51 = vmul.f32 %v3033_v9, %v3385_v29  ;;  %v612_v34 = vmul.f32 %v3037_v11, %v3385_v29  ;;  %v613_v45 = vmul.f32 %v3037_v11, %v3388_v31 }
  0x7a   : > { %v476_v56 = vrot.slane %v367_v36, 1  ;;  %v1925_v54 = vadd.f32 %v1830_v52, %v1681_v41  ;;  %v882_v42 = vadd.f32 %v850_v28, %v814_v30  ;;  %v851_v47 = vmul.f32 %v3041_v14, %v3458_v46 }
  0x7b   : > { %v477_v57 = vrot.slane %v368_v37, 1  ;;  %v721_v60 = vrot.slane %v612_v34, 2  ;;  %v722_v2 = vrot.slane %v613_v45, 2  ;;  %v925_v3 = vmul.f32 %v3043_v15, %v3458_v46 }
  0x7c   : > { %v926_v1 = vmul.f32 %v3043_v15, %v3461_v48  ;;  %2792 = vmatprep.mubr.msk.f32.mxu0 %vm1955_vm3, %v1925_v54  ;;  %v1126_v29 = vadd.f32 %v1032_v25, %v882_v42  ;;  %v1169_v33 = vmul.f32 %v3045_v16, %v3458_v46  ;;  %v1170_v49 = vmul.f32 %v3045_v16, %v3461_v48 }
  0x7d   : > { %v478_v8 = vsel %vm445_vm1, %v476_v56, %v477_v57  ;;  %v723_v12 = vsel %vm690_vm2, %v721_v60, %v722_v2  ;;  %v1033_v55 = vrot.slane %v925_v3, 1  ;;  %v1588_v21 = vsel %vm445_vm1, %v1585_v13, %v1587_v58  ;;  %v3571_v56 = vld [vmem:[%s3031_s10 + $0xd0] sm:$0x3] }
  0x7e   : > { %v570_v32 = vadd.f32 %v478_v8, %v325_v51  ;;  %v1034_v61 = vrot.slane %v926_v1, 1  ;;  %v1370_v20 = vadd.f32 %v1276_v43, %v1126_v29  ;;  %v1277_v53 = vrot.slane %v1169_v33, 2 }
  0x7f   : > { %v1278_v0 = vrot.slane %v1170_v49, 2  ;;  %v1832_v5 = vsel %vm690_vm2, %v1829_v22, %v1831_v18  ;;  %v1481_v28 = vmul.f32 %v3058_v23, %v3540_v24  ;;  %v1482_v38 = vmul.f32 %v3058_v23, %v3543_v26 }
  0x80   : > { %v815_v7 = vadd.f32 %v723_v12, %v570_v32  ;;  %v1438_v39 = vadd.f32 %v1406_v59, %v1370_v20  ;;  %v1035_v44 = vsel %vm445_vm1, %v1033_v55, %v1034_v61  ;;  %v1725_v13 = vmul.f32 %v3088_v50, %v3540_v24 }
  0x81   : > { %v3555_v35 = vmul.f32 %v3088_v50, %v3543_v26  ;;  %v1407_v22 = vmul.f32 %v3047_v17, %v3540_v24  ;;  %v1589_v63 = vrot.slane %v1481_v28, 1  ;;  %v1590_v6 = vrot.slane %v1482_v38, 1 }
  0x82   : > { %v883_v40 = vadd.f32 %v851_v47, %v815_v7  ;;  %v1682_v19 = vadd.f32 %v1588_v21, %v1438_v39  ;;  %v1279_v52 = vsel %vm690_vm2, %v1277_v53, %v1278_v0  ;;  %v326_v27 = vmul.f32 %v3033_v9, %v3388_v31 }
  0x83   : > { %v369_v59 = vmul.f32 %v3035_v10, %v3416_v62  ;;  %v1833_v43 = vrot.slane %v1725_v13, 2  ;;  %v1834_v58 = vrot.slane %v3555_v35, 2  ;;  %v614_v36 = vmul.f32 %v3037_v11, %v3416_v62 }
  0x84   : > { %v1127_v25 = vadd.f32 %v1035_v44, %v883_v40  ;;  %v1926_v41 = vadd.f32 %v1832_v5, %v1682_v19  ;;  %v1591_v30 = vsel %vm445_vm1, %v1589_v63, %v1590_v6  ;;  %v927_v37 = vmul.f32 %v3043_v15, %v3495_v4 }
  0x85   : > { %v479_v18 = vrot.slane %v369_v59, 1  ;;  %v724_v31 = vrot.slane %v614_v36, 2  ;;  %v852_v34 = vmul.f32 %v3041_v14, %v3461_v48  ;;  %v1171_v45 = vmul.f32 %v3045_v16, %v3495_v4  ;;  %v3613_v59 = vld [vmem:[%s3031_s10 + $0xd8] sm:$0xff] }
  0x86   : > { %v1371_v51 = vadd.f32 %v1279_v52, %v1127_v25  ;;  %2793 = vmatmul.mubr.msk.f32.gmra.mrb[10].mxu0 %vm1955_vm3, %v1926_v41  ;;  %v1036_v54 = vrot.slane %v927_v37, 1  ;;  %v1483_v42 = vmul.f32 %v3058_v23, %v3571_v56  ;;  %v1727_v47 = vmul.f32 %v3088_v50, %v3571_v56  ;;  %v3616_v25 = vld [vmem:[%s3031_s10 + $0xe0] sm:$0xff] }
  0x87   : > { %v480_v62 = vsel %vm445_vm1, %v477_v57, %v479_v18  ;;  %v725_v1 = vsel %vm690_vm2, %v722_v2, %v724_v31  ;;  %v1280_v29 = vrot.slane %v1171_v45, 2  ;;  %v1835_v8 = vsel %vm690_vm2, %v1833_v43, %v1834_v58 }
  0x88   : > { %v1439_v60 = vadd.f32 %v1407_v22, %v1371_v51  ;;  %v571_v3 = vadd.f32 %v480_v62, %v326_v27  ;;  %v1037_v33 = vsel %vm445_vm1, %v1034_v61, %v1036_v54  ;;  %v1408_v49 = vmul.f32 %v3047_v17, %v3543_v26 }
  0x89   : > { %v1592_v57 = vrot.slane %v1483_v42, 1  ;;  %v1836_v55 = vrot.slane %v1727_v47, 2  ;;  %v370_v20 = vmul.f32 %v3035_v10, %v3458_v46  ;;  %v1281_v21 = vsel %vm690_vm2, %v1278_v0, %v1280_v29 }
  0x8a   : > { %v1683_v32 = vadd.f32 %v1591_v30, %v1439_v60  ;;  %v816_v12 = vadd.f32 %v725_v1, %v571_v3  ;;  %v327_v2 = vmul.f32 %v3033_v9, %v3458_v46  ;;  %v371_v53 = vmul.f32 %v3035_v10, %v3461_v48 }
  0x8b   : > { %v615_v61 = vmul.f32 %v3037_v11, %v3458_v46  ;;  %v481_v28 = vrot.slane %v370_v20, 1  ;;  %v616_v38 = vmul.f32 %v3037_v11, %v3461_v48  ;;  %v1593_v39 = vsel %vm445_vm1, %v1590_v6, %v1592_v57 }
  0x8c   : > { %v1927_v5 = vadd.f32 %v1835_v8, %v1683_v32  ;;  %v884_v7 = vadd.f32 %v852_v34, %v816_v12  ;;  %v482_v0 = vrot.slane %v371_v53, 1  ;;  %v928_v13 = vmul.f32 %v3043_v15, %v3540_v24 }
  0x8d   : > { %v726_v44 = vrot.slane %v615_v61, 2  ;;  %v727_v40 = vrot.slane %v616_v38, 2  ;;  %v929_v46 = vmul.f32 %v3043_v15, %v3543_v26  ;;  %v1172_v22 = vmul.f32 %v3045_v16, %v3540_v24 }
  0x8e   : > { %2795 = vmatprep.mubr.msk.f32.mxu0 %vm1955_vm3, %v1927_v5  ;;  %v1128_v35 = vadd.f32 %v1037_v33, %v884_v7  ;;  %v483_v63 = vsel %vm445_vm1, %v481_v28, %v482_v0  ;;  %v853_v6 = vmul.f32 %v3041_v14, %v3540_v24  ;;  %v1038_v19 = vrot.slane %v928_v13, 1 }
  0x8f   : > { %v1173_v52 = vmul.f32 %v3045_v16, %v3543_v26  ;;  %v572_v43 = vadd.f32 %v483_v63, %v327_v2  ;;  %v728_v36 = vsel %vm690_vm2, %v726_v44, %v727_v40  ;;  %v1039_v41 = vrot.slane %v929_v46, 1  ;;  %v3650_v2 = vld [vmem:[%s3031_s10 + $0xe8] sm:$0x3] }
  0x90   : > { %v1372_v27 = vadd.f32 %v1281_v21, %v1128_v35  ;;  %v1282_v30 = vrot.slane %v1172_v22, 2  ;;  %v1484_v37 = vmul.f32 %v3058_v23, %v3613_v59  ;;  %v3623_v51 = vmul.f32 %v3058_v23, %v3616_v25 }
  0x91   : > { %v1283_v18 = vrot.slane %v1173_v52, 2  ;;  %v1837_v34 = vsel %vm690_vm2, %v1834_v58, %v1836_v55  ;;  %v817_v45 = vadd.f32 %v728_v36, %v572_v43  ;;  %v1728_v62 = vmul.f32 %v3088_v50, %v3613_v59 }
  0x92   : > { %v1440_v31 = vadd.f32 %v1408_v49, %v1372_v27  ;;  %v1040_v54 = vsel %vm445_vm1, %v1038_v19, %v1039_v41  ;;  %v1594_v42 = vrot.slane %v1484_v37, 1  ;;  %v1595_v47 = vrot.slane %v3623_v51, 1 }
  0x93   : > { %v3632_v60 = vmul.f32 %v3088_v50, %v3616_v25  ;;  %v885_v1 = vadd.f32 %v853_v6, %v817_v45  ;;  %v1284_v29 = vsel %vm690_vm2, %v1282_v30, %v1283_v18  ;;  %v1409_v58 = vmul.f32 %v3047_v17, %v3613_v59 }
  0x94   : > { %v1684_v3 = vadd.f32 %v1593_v39, %v1440_v31  ;;  %v1838_v8 = vrot.slane %v1728_v62, 2  ;;  %v328_v33 = vmul.f32 %v3033_v9, %v3461_v48  ;;  %v372_v49 = vmul.f32 %v3035_v10, %v3495_v4 }
  0x95   : > { %v617_v57 = vmul.f32 %v3037_v11, %v3495_v4  ;;  %v1129_v12 = vadd.f32 %v1040_v54, %v885_v1  ;;  %v1839_v55 = vrot.slane %v3632_v60, 2  ;;  %v930_v20 = vmul.f32 %v3043_v15, %v3571_v56 }
  0x96   : > { %v1928_v32 = vadd.f32 %v1837_v34, %v1684_v3  ;;  %v1596_v21 = vsel %vm445_vm1, %v1594_v42, %v1595_v47  ;;  %v484_v48 = vrot.slane %v372_v49, 1  ;;  %v1174_v61 = vmul.f32 %v3045_v16, %v3571_v56 }
  0x97   : > { %v729_v53 = vrot.slane %v617_v57, 2  ;;  %v1373_v4 = vadd.f32 %v1284_v29, %v1129_v12  ;;  %v854_v5 = vmul.f32 %v3041_v14, %v3543_v26  ;;  %v1041_v7 = vrot.slane %v930_v20, 1  ;;  %v3695_v20 = vld [vmem:[%s3031_s10 + $0xf0] sm:$0xff] }
  0x98   : > { %2796 = vmatmul.mubr.msk.f32.gmra.mrb[12].mxu0 %vm1955_vm3, %v1928_v32  ;;  %v1486_v28 = vmul.f32 %v3058_v23, %v3650_v2  ;;  %v485_v38 = vsel %vm445_vm1, %v482_v0, %v484_v48  ;;  %v1285_v44 = vrot.slane %v1174_v61, 2  ;;  %v1730_v13 = vmul.f32 %v3088_v50, %v3650_v2 }
  0x99   : > { %v730_v39 = vsel %vm690_vm2, %v727_v40, %v729_v53  ;;  %v1441_v35 = vadd.f32 %v1409_v58, %v1373_v4  ;;  %v1840_v46 = vsel %vm690_vm2, %v1838_v8, %v1839_v55  ;;  %v573_v22 = vadd.f32 %v485_v38, %v328_v33 }
  0x9a   : > { %v1410_v63 = vmul.f32 %v3047_v17, %v3616_v25  ;;  %v1042_v6 = vsel %vm445_vm1, %v1039_v41, %v1041_v7  ;;  %v1286_v19 = vsel %vm690_vm2, %v1283_v18, %v1285_v44  ;;  %v1597_v52 = vrot.slane %v1486_v28, 1 }
  0x9b   : > { %v373_v0 = vmul.f32 %v3035_v10, %v3540_v24  ;;  %v1685_v40 = vadd.f32 %v1596_v21, %v1441_v35  ;;  %v818_v27 = vadd.f32 %v730_v39, %v573_v22  ;;  %v1841_v43 = vrot.slane %v1730_v13, 2  ;;  %v3698_v21 = vld [vmem:[%s3031_s10 + $0xf8] sm:$0xff] }
  0x9c   : > { %v374_v36 = vmul.f32 %v3035_v10, %v3543_v26  ;;  %v329_v30 = vmul.f32 %v3033_v9, %v3540_v24  ;;  %v618_v31 = vmul.f32 %v3037_v11, %v3540_v24  ;;  %v619_v41 = vmul.f32 %v3037_v11, %v3543_v26 }
  0x9d   : > { %v486_v37 = vrot.slane %v373_v0, 1  ;;  %v1929_v18 = vadd.f32 %v1840_v46, %v1685_v40  ;;  %v886_v34 = vadd.f32 %v854_v5, %v818_v27  ;;  %v855_v62 = vmul.f32 %v3041_v14, %v3613_v59 }
  0x9e   : > { %v487_v45 = vrot.slane %v374_v36, 1  ;;  %v731_v54 = vrot.slane %v618_v31, 2  ;;  %v732_v42 = vrot.slane %v619_v41, 2  ;;  %v931_v60 = vmul.f32 %v3043_v15, %v3613_v59 }
  0x9f   : > { %v932_v3 = vmul.f32 %v3043_v15, %v3616_v25  ;;  %2798 = vmatprep.mubr.msk.f32.mxu0 %vm1955_vm3, %v1929_v18  ;;  %v1130_v24 = vadd.f32 %v1042_v6, %v886_v34  ;;  %v1175_v29 = vmul.f32 %v3045_v16, %v3613_v59  ;;  %v1176_v58 = vmul.f32 %v3045_v16, %v3616_v25 }
  0xa0   : > { %v488_v1 = vsel %vm445_vm1, %v486_v37, %v487_v45  ;;  %v733_v33 = vsel %vm690_vm2, %v731_v54, %v732_v42  ;;  %v1043_v49 = vrot.slane %v931_v60, 1  ;;  %v1598_v12 = vsel %vm445_vm1, %v1595_v47, %v1597_v52  ;;  %v3726_v37 = vld [vmem:[%s3031_s10 + $0x100] sm:$0x3] }
  0xa1   : > { %v574_v8 = vadd.f32 %v488_v1, %v329_v30  ;;  %v1044_v57 = vrot.slane %v932_v3, 1  ;;  %v1374_v32 = vadd.f32 %v1286_v19, %v1130_v24  ;;  %v1287_v48 = vrot.slane %v1175_v29, 2 }
  0xa2   : > { %v1288_v53 = vrot.slane %v1176_v58, 2  ;;  %v1842_v61 = vsel %vm690_vm2, %v1839_v55, %v1841_v43  ;;  %v1487_v5 = vmul.f32 %v3058_v23, %v3695_v20  ;;  %v1488_v7 = vmul.f32 %v3058_v23, %v3698_v21 }
  0xa3   : > { %v819_v4 = vadd.f32 %v733_v33, %v574_v8  ;;  %v1442_v28 = vadd.f32 %v1410_v63, %v1374_v32  ;;  %v1045_v51 = vsel %vm445_vm1, %v1043_v49, %v1044_v57  ;;  %v1731_v47 = vmul.f32 %v3088_v50, %v3695_v20 }
  0xa4   : > { %v3710_v38 = vmul.f32 %v3088_v50, %v3698_v21  ;;  %v1411_v55 = vmul.f32 %v3047_v17, %v3695_v20  ;;  %v1599_v44 = vrot.slane %v1487_v5, 1  ;;  %v1600_v13 = vrot.slane %v1488_v7, 1 }
  0xa5   : > { %v887_v39 = vadd.f32 %v855_v62, %v819_v4  ;;  %v1686_v35 = vadd.f32 %v1598_v12, %v1442_v28  ;;  %v1289_v46 = vsel %vm690_vm2, %v1287_v48, %v1288_v53  ;;  %v330_v22 = vmul.f32 %v3033_v9, %v3543_v26 }
  0xa6   : > { %v375_v63 = vmul.f32 %v3035_v10, %v3571_v56  ;;  %v1843_v19 = vrot.slane %v1731_v47, 2  ;;  %v1844_v52 = vrot.slane %v3710_v38, 2  ;;  %v620_v0 = vmul.f32 %v3037_v11, %v3571_v56 }
  0xa7   : > { %v1131_v6 = vadd.f32 %v1045_v51, %v887_v39  ;;  %v1930_v40 = vadd.f32 %v1842_v61, %v1686_v35  ;;  %v1601_v27 = vsel %vm445_vm1, %v1599_v44, %v1600_v13  ;;  %v933_v36 = vmul.f32 %v3043_v15, %v3650_v2 }
  0xa8   : > { %v489_v43 = vrot.slane %v375_v63, 1  ;;  %v734_v26 = vrot.slane %v620_v0, 2  ;;  %v856_v31 = vmul.f32 %v3041_v14, %v3616_v25  ;;  %v1177_v41 = vmul.f32 %v3045_v16, %v3650_v2  ;;  %v3768_v63 = vld [vmem:[%s3031_s10 + $0x108] sm:$0xff] }
  0xa9   : > { %v1375_v30 = vadd.f32 %v1289_v46, %v1131_v6  ;;  %2799 = vmatmul.mubr.msk.f32.gmra.mrb[14].mxu0 %vm1955_vm3, %v1930_v40  ;;  %v1046_v18 = vrot.slane %v933_v36, 1  ;;  %v1489_v34 = vmul.f32 %v3058_v23, %v3726_v37  ;;  %v1733_v62 = vmul.f32 %v3088_v50, %v3726_v37  ;;  %v3771_v6 = vld [vmem:[%s3031_s10 + $0x110] sm:$0xff] }
  0xaa   : > { %v490_v56 = vsel %vm445_vm1, %v487_v45, %v489_v43  ;;  %v735_v3 = vsel %vm690_vm2, %v732_v42, %v734_v26  ;;  %v1290_v24 = vrot.slane %v1177_v41, 2  ;;  %v1845_v1 = vsel %vm690_vm2, %v1843_v19, %v1844_v52 }
  0xab   : > { %v1443_v54 = vadd.f32 %v1411_v55, %v1375_v30  ;;  %v575_v60 = vadd.f32 %v490_v56, %v330_v22  ;;  %v1047_v29 = vsel %vm445_vm1, %v1044_v57, %v1046_v18  ;;  %v1412_v58 = vmul.f32 %v3047_v17, %v3698_v21 }
  0xac   : > { %v1602_v45 = vrot.slane %v1489_v34, 1  ;;  %v1846_v49 = vrot.slane %v1733_v62, 2  ;;  %v376_v32 = vmul.f32 %v3035_v10, %v3613_v59  ;;  %v1291_v12 = vsel %vm690_vm2, %v1288_v53, %v1290_v24 }
  0xad   : > { %v1687_v8 = vadd.f32 %v1601_v27, %v1443_v54  ;;  %v820_v33 = vadd.f32 %v735_v3, %v575_v60  ;;  %v331_v42 = vmul.f32 %v3033_v9, %v3613_v59  ;;  %v377_v48 = vmul.f32 %v3035_v10, %v3616_v25 }
  0xae   : > { %v621_v57 = vmul.f32 %v3037_v11, %v3613_v59  ;;  %v491_v5 = vrot.slane %v376_v32, 1  ;;  %v622_v7 = vmul.f32 %v3037_v11, %v3616_v25  ;;  %v1603_v28 = vsel %vm445_vm1, %v1600_v13, %v1602_v45 }
  0xaf   : > { %v1931_v61 = vadd.f32 %v1845_v1, %v1687_v8  ;;  %v888_v4 = vadd.f32 %v856_v31, %v820_v33  ;;  %v492_v53 = vrot.slane %v377_v48, 1  ;;  %v934_v47 = vmul.f32 %v3043_v15, %v3695_v20 }
  0xb0   : > { %v736_v51 = vrot.slane %v621_v57, 2  ;;  %v737_v39 = vrot.slane %v622_v7, 2  ;;  %v935_v59 = vmul.f32 %v3043_v15, %v3698_v21  ;;  %v1178_v55 = vmul.f32 %v3045_v16, %v3695_v20 }
  0xb1   : > { %2801 = vmatprep.mubr.msk.f32.mxu0 %vm1955_vm3, %v1931_v61  ;;  %v1132_v38 = vadd.f32 %v1047_v29, %v888_v4  ;;  %v493_v44 = vsel %vm445_vm1, %v491_v5, %v492_v53  ;;  %v857_v13 = vmul.f32 %v3041_v14, %v3695_v20  ;;  %v1048_v35 = vrot.slane %v934_v47, 1 }
  0xb2   : > { %v1179_v46 = vmul.f32 %v3045_v16, %v3698_v21  ;;  %v576_v19 = vadd.f32 %v493_v44, %v331_v42  ;;  %v738_v0 = vsel %vm690_vm2, %v736_v51, %v737_v39  ;;  %v1049_v40 = vrot.slane %v935_v59, 1  ;;  %v3805_v42 = vld [vmem:[%s3031_s10 + $0x118] sm:$0x3] }
  0xb3   : > { %v1376_v22 = vadd.f32 %v1291_v12, %v1132_v38  ;;  %v1292_v27 = vrot.slane %v1178_v55, 2  ;;  %v1490_v36 = vmul.f32 %v3058_v23, %v3768_v63  ;;  %v3778_v30 = vmul.f32 %v3058_v23, %v3771_v6 }
  0xb4   : > { %v1293_v43 = vrot.slane %v1179_v46, 2  ;;  %v1847_v31 = vsel %vm690_vm2, %v1844_v52, %v1846_v49  ;;  %v821_v41 = vadd.f32 %v738_v0, %v576_v19  ;;  %v1734_v56 = vmul.f32 %v3088_v50, %v3768_v63 }
  0xb5   : > { %v1444_v26 = vadd.f32 %v1412_v58, %v1376_v22  ;;  %v1050_v18 = vsel %vm445_vm1, %v1048_v35, %v1049_v40  ;;  %v1604_v34 = vrot.slane %v1490_v36, 1  ;;  %v1605_v62 = vrot.slane %v3778_v30, 1 }
  0xb6   : > { %v3787_v54 = vmul.f32 %v3088_v50, %v3771_v6  ;;  %v889_v3 = vadd.f32 %v857_v13, %v821_v41  ;;  %v1294_v24 = vsel %vm690_vm2, %v1292_v27, %v1293_v43  ;;  %v1413_v52 = vmul.f32 %v3047_v17, %v3768_v63 }
  0xb7   : > { %v1688_v60 = vadd.f32 %v1603_v28, %v1444_v26  ;;  %v1848_v1 = vrot.slane %v1734_v56, 2  ;;  %v332_v29 = vmul.f32 %v3033_v9, %v3616_v25  ;;  %v378_v58 = vmul.f32 %v3035_v10, %v3650_v2 }
  0xb8   : > { %v623_v45 = vmul.f32 %v3037_v11, %v3650_v2  ;;  %v1133_v33 = vadd.f32 %v1050_v18, %v889_v3  ;;  %v1849_v49 = vrot.slane %v3787_v54, 2  ;;  %v936_v32 = vmul.f32 %v3043_v15, %v3726_v37 }
  0xb9   : > { %v1932_v8 = vadd.f32 %v1847_v31, %v1688_v60  ;;  %v1606_v12 = vsel %vm445_vm1, %v1604_v34, %v1605_v62  ;;  %v494_v25 = vrot.slane %v378_v58, 1  ;;  %v1180_v57 = vmul.f32 %v3045_v16, %v3726_v37 }
  0xba   : > { %v739_v48 = vrot.slane %v623_v45, 2  ;;  %v1377_v2 = vadd.f32 %v1294_v24, %v1133_v33  ;;  %v858_v61 = vmul.f32 %v3041_v14, %v3698_v21  ;;  %v1051_v4 = vrot.slane %v936_v32, 1  ;;  %v3850_v32 = vld [vmem:[%s3031_s10 + $0x120] sm:$0xff] }
  0xbb   : > { %2802 = vmatmul.mubr.msk.f32.gmra.mrb[16].mxu0 %vm1955_vm3, %v1932_v8  ;;  %v1492_v5 = vmul.f32 %v3058_v23, %v3805_v42  ;;  %v495_v7 = vsel %vm445_vm1, %v492_v53, %v494_v25  ;;  %v1295_v51 = vrot.slane %v1180_v57, 2  ;;  %v1736_v47 = vmul.f32 %v3088_v50, %v3805_v42 }
  0xbc   : > { %v740_v28 = vsel %vm690_vm2, %v737_v39, %v739_v48  ;;  %v1445_v38 = vadd.f32 %v1413_v52, %v1377_v2  ;;  %v1850_v59 = vsel %vm690_vm2, %v1848_v1, %v1849_v49  ;;  %v577_v55 = vadd.f32 %v495_v7, %v332_v29 }
  0xbd   : > { %v1414_v44 = vmul.f32 %v3047_v17, %v3771_v6  ;;  %v1052_v13 = vsel %vm445_vm1, %v1049_v40, %v1051_v4  ;;  %v1296_v35 = vsel %vm690_vm2, %v1293_v43, %v1295_v51  ;;  %v1607_v46 = vrot.slane %v1492_v5, 1 }
  0xbe   : > { %v379_v53 = vmul.f32 %v3035_v10, %v3695_v20  ;;  %v1689_v39 = vadd.f32 %v1606_v12, %v1445_v38  ;;  %v822_v22 = vadd.f32 %v740_v28, %v577_v55  ;;  %v1851_v19 = vrot.slane %v1736_v47, 2  ;;  %v3853_v12 = vld [vmem:[%s3031_s10 + $0x128] sm:$0xff] }
  0xbf   : > { %v380_v0 = vmul.f32 %v3035_v10, %v3698_v21  ;;  %v333_v27 = vmul.f32 %v3033_v9, %v3695_v20  ;;  %v624_v26 = vmul.f32 %v3037_v11, %v3695_v20  ;;  %v625_v40 = vmul.f32 %v3037_v11, %v3698_v21 }
  0xc0   : > { %v496_v36 = vrot.slane %v379_v53, 1  ;;  %v1933_v43 = vadd.f32 %v1850_v59, %v1689_v39  ;;  %v890_v31 = vadd.f32 %v858_v61, %v822_v22  ;;  %v859_v56 = vmul.f32 %v3041_v14, %v3768_v63 }
  0xc1   : > { %v497_v41 = vrot.slane %v380_v0, 1  ;;  %v741_v18 = vrot.slane %v624_v26, 2  ;;  %v742_v34 = vrot.slane %v625_v40, 2  ;;  %v937_v54 = vmul.f32 %v3043_v15, %v3768_v63 }
  0xc2   : > { %v938_v60 = vmul.f32 %v3043_v15, %v3771_v6  ;;  %2804 = vmatprep.mubr.msk.f32.mxu0 %vm1955_vm3, %v1933_v43  ;;  %v1134_v20 = vadd.f32 %v1052_v13, %v890_v31  ;;  %v1181_v24 = vmul.f32 %v3045_v16, %v3768_v63  ;;  %v1182_v52 = vmul.f32 %v3045_v16, %v3771_v6 }
  0xc3   : > { %v498_v3 = vsel %vm445_vm1, %v496_v36, %v497_v41  ;;  %v743_v29 = vsel %vm690_vm2, %v741_v18, %v742_v34  ;;  %v1053_v58 = vrot.slane %v937_v54, 1  ;;  %v1608_v33 = vsel %vm445_vm1, %v1605_v62, %v1607_v46  ;;  %v3881_v36 = vld [vmem:[%s3031_s10 + $0x130] sm:$0x3] }
  0xc4   : > { %v578_v1 = vadd.f32 %v498_v3, %v333_v27  ;;  %v1054_v45 = vrot.slane %v938_v60, 1  ;;  %v1378_v8 = vadd.f32 %v1296_v35, %v1134_v20  ;;  %v1297_v25 = vrot.slane %v1181_v24, 2 }
  0xc5   : > { %v1298_v48 = vrot.slane %v1182_v52, 2  ;;  %v1852_v57 = vsel %vm690_vm2, %v1849_v49, %v1851_v19  ;;  %v1493_v61 = vmul.f32 %v3058_v23, %v3850_v32  ;;  %v1494_v4 = vmul.f32 %v3058_v23, %v3853_v12 }
  0xc6   : > { %v823_v2 = vadd.f32 %v743_v29, %v578_v1  ;;  %v1446_v5 = vadd.f32 %v1414_v44, %v1378_v8  ;;  %v1055_v30 = vsel %vm445_vm1, %v1053_v58, %v1054_v45  ;;  %v1737_v62 = vmul.f32 %v3088_v50, %v3850_v32 }
  0xc7   : > { %v3865_v7 = vmul.f32 %v3088_v50, %v3853_v12  ;;  %v1415_v49 = vmul.f32 %v3047_v17, %v3850_v32  ;;  %v1609_v51 = vrot.slane %v1493_v61, 1  ;;  %v1610_v47 = vrot.slane %v1494_v4, 1 }
  0xc8   : > { %v891_v28 = vadd.f32 %v859_v56, %v823_v2  ;;  %v1690_v38 = vadd.f32 %v1608_v33, %v1446_v5  ;;  %v1299_v59 = vsel %vm690_vm2, %v1297_v25, %v1298_v48  ;;  %v334_v55 = vmul.f32 %v3033_v9, %v3698_v21 }
  0xc9   : > { %v381_v44 = vmul.f32 %v3035_v10, %v3726_v37  ;;  %v1853_v35 = vrot.slane %v1737_v62, 2  ;;  %v1854_v46 = vrot.slane %v3865_v7, 2  ;;  %v626_v53 = vmul.f32 %v3037_v11, %v3726_v37 }
  0xca   : > { %v1135_v13 = vadd.f32 %v1055_v30, %v891_v28  ;;  %v1934_v39 = vadd.f32 %v1852_v57, %v1690_v38  ;;  %v1611_v22 = vsel %vm445_vm1, %v1609_v51, %v1610_v47  ;;  %v939_v0 = vmul.f32 %v3043_v15, %v3805_v42 }
  0xcb   : > { %v499_v19 = vrot.slane %v381_v44, 1  ;;  %v744_v21 = vrot.slane %v626_v53, 2  ;;  %v860_v26 = vmul.f32 %v3041_v14, %v3771_v6  ;;  %v1183_v40 = vmul.f32 %v3045_v16, %v3805_v42  ;;  %v3923_v44 = vld [vmem:[%s3031_s10 + $0x138] sm:$0xff] }
  0xcc   : > { %v1379_v27 = vadd.f32 %v1299_v59, %v1135_v13  ;;  %2805 = vmatmul.mubr.msk.f32.gmra.mrb[18].mxu0 %vm1955_vm3, %v1934_v39  ;;  %v1056_v43 = vrot.slane %v939_v0, 1  ;;  %v1495_v31 = vmul.f32 %v3058_v23, %v3881_v36  ;;  %v1739_v56 = vmul.f32 %v3088_v50, %v3881_v36  ;;  %v3926_v13 = vld [vmem:[%s3031_s10 + $0x140] sm:$0xff] }
  0xcd   : > { %v500_v37 = vsel %vm445_vm1, %v497_v41, %v499_v19  ;;  %v745_v60 = vsel %vm690_vm2, %v742_v34, %v744_v21  ;;  %v1300_v20 = vrot.slane %v1183_v40, 2  ;;  %v1855_v3 = vsel %vm690_vm2, %v1853_v35, %v1854_v46 }
  0xce   : > { %v1447_v18 = vadd.f32 %v1415_v49, %v1379_v27  ;;  %v579_v54 = vadd.f32 %v500_v37, %v334_v55  ;;  %v1057_v24 = vsel %vm445_vm1, %v1054_v45, %v1056_v43  ;;  %v1416_v52 = vmul.f32 %v3047_v17, %v3853_v12 }
  0xcf   : > { %v1612_v41 = vrot.slane %v1495_v31, 1  ;;  %v1856_v58 = vrot.slane %v1739_v56, 2  ;;  %v382_v8 = vmul.f32 %v3035_v10, %v3768_v63  ;;  %v1301_v33 = vsel %vm690_vm2, %v1298_v48, %v1300_v20 }
  0xd0   : > { %v1691_v1 = vadd.f32 %v1611_v22, %v1447_v18  ;;  %v824_v29 = vadd.f32 %v745_v60, %v579_v54  ;;  %v335_v34 = vmul.f32 %v3033_v9, %v3768_v63  ;;  %v383_v25 = vmul.f32 %v3035_v10, %v3771_v6 }
  0xd1   : > { %v627_v45 = vmul.f32 %v3037_v11, %v3768_v63  ;;  %v501_v61 = vrot.slane %v382_v8, 1  ;;  %v628_v4 = vmul.f32 %v3037_v11, %v3771_v6  ;;  %v1613_v5 = vsel %vm445_vm1, %v1610_v47, %v1612_v41 }
  0xd2   : > { %v1935_v57 = vadd.f32 %v1855_v3, %v1691_v1  ;;  %v892_v2 = vadd.f32 %v860_v26, %v824_v29  ;;  %v502_v48 = vrot.slane %v383_v25, 1  ;;  %v940_v62 = vmul.f32 %v3043_v15, %v3850_v32 }
  0xd3   : > { %v746_v30 = vrot.slane %v627_v45, 2  ;;  %v747_v28 = vrot.slane %v628_v4, 2  ;;  %v941_v63 = vmul.f32 %v3043_v15, %v3853_v12  ;;  %v1184_v49 = vmul.f32 %v3045_v16, %v3850_v32 }
  0xd4   : > { %2807 = vmatprep.mubr.msk.f32.mxu0 %vm1955_vm3, %v1935_v57  ;;  %v1136_v7 = vadd.f32 %v1057_v24, %v892_v2  ;;  %v503_v51 = vsel %vm445_vm1, %v501_v61, %v502_v48  ;;  %v861_v47 = vmul.f32 %v3041_v14, %v3850_v32  ;;  %v1058_v38 = vrot.slane %v940_v62, 1 }
  0xd5   : > { %v1185_v59 = vmul.f32 %v3045_v16, %v3853_v12  ;;  %v580_v35 = vadd.f32 %v503_v51, %v335_v34  ;;  %v748_v53 = vsel %vm690_vm2, %v746_v30, %v747_v28  ;;  %v1059_v39 = vrot.slane %v941_v63, 1  ;;  %v3960_v34 = vld [vmem:[%s3031_s10 + $0x148] sm:$0x3] }
  0xd6   : > { %v1380_v55 = vadd.f32 %v1301_v33, %v1136_v7  ;;  %v1302_v22 = vrot.slane %v1184_v49, 2  ;;  %v1496_v0 = vmul.f32 %v3058_v23, %v3923_v44  ;;  %v3933_v27 = vmul.f32 %v3058_v23, %v3926_v13 }
  0xd7   : > { %v1303_v19 = vrot.slane %v1185_v59, 2  ;;  %v1857_v26 = vsel %vm690_vm2, %v1854_v46, %v1856_v58  ;;  %v825_v40 = vadd.f32 %v748_v53, %v580_v35  ;;  %v1740_v37 = vmul.f32 %v3088_v50, %v3923_v44 }
  0xd8   : > { %v1448_v21 = vadd.f32 %v1416_v52, %v1380_v55  ;;  %v1060_v43 = vsel %vm445_vm1, %v1058_v38, %v1059_v39  ;;  %v1614_v31 = vrot.slane %v1496_v0, 1  ;;  %v1615_v56 = vrot.slane %v3933_v27, 1 }
  0xd9   : > { %v3942_v18 = vmul.f32 %v3088_v50, %v3926_v13  ;;  %v893_v60 = vadd.f32 %v861_v47, %v825_v40  ;;  %v1304_v20 = vsel %vm690_vm2, %v1302_v22, %v1303_v19  ;;  %v1417_v46 = vmul.f32 %v3047_v17, %v3923_v44 }
  0xda   : > { %v1692_v54 = vadd.f32 %v1613_v5, %v1448_v21  ;;  %v1858_v3 = vrot.slane %v1740_v37, 2  ;;  %v336_v24 = vmul.f32 %v3033_v9, %v3771_v6  ;;  %v384_v52 = vmul.f32 %v3035_v10, %v3805_v42 }
  0xdb   : > { %v629_v41 = vmul.f32 %v3037_v11, %v3805_v42  ;;  %v1137_v29 = vadd.f32 %v1060_v43, %v893_v60  ;;  %v1859_v58 = vrot.slane %v3942_v18, 2  ;;  %v942_v8 = vmul.f32 %v3043_v15, %v3881_v36 }
  0xdc   : > { %v1936_v1 = vadd.f32 %v1857_v26, %v1692_v54  ;;  %v1616_v33 = vsel %vm445_vm1, %v1614_v31, %v1615_v56  ;;  %v504_v6 = vrot.slane %v384_v52, 1  ;;  %v1186_v45 = vmul.f32 %v3045_v16, %v3881_v36 }
  0xdd   : > { %v749_v25 = vrot.slane %v629_v41, 2  ;;  %v1381_v42 = vadd.f32 %v1304_v20, %v1137_v29  ;;  %v862_v57 = vmul.f32 %v3041_v14, %v3853_v12  ;;  %v1061_v2 = vrot.slane %v942_v8, 1  ;;  %v4005_v8 = vld [vmem:[%s3031_s10 + $0x150] sm:$0xff] }
  0xde   : > { %2808 = vmatmul.mubr.msk.f32.gmra.mrb[20].mxu0 %vm1955_vm3, %v1936_v1  ;;  %v1498_v61 = vmul.f32 %v3058_v23, %v3960_v34  ;;  %v505_v4 = vsel %vm445_vm1, %v502_v48, %v504_v6  ;;  %v1305_v30 = vrot.slane %v1186_v45, 2  ;;  %v1742_v62 = vmul.f32 %v3088_v50, %v3960_v34 }
  0xdf   : > { %v750_v5 = vsel %vm690_vm2, %v747_v28, %v749_v25  ;;  %v1449_v7 = vadd.f32 %v1417_v46, %v1381_v42  ;;  %v1860_v63 = vsel %vm690_vm2, %v1858_v3, %v1859_v58  ;;  %v581_v49 = vadd.f32 %v505_v4, %v336_v24 }
  0xe0   : > { %v1418_v51 = vmul.f32 %v3047_v17, %v3926_v13  ;;  %v1062_v47 = vsel %vm445_vm1, %v1059_v39, %v1061_v2  ;;  %v1306_v38 = vsel %vm690_vm2, %v1303_v19, %v1305_v30  ;;  %v1617_v59 = vrot.slane %v1498_v61, 1 }
  0xe1   : > { %v385_v48 = vmul.f32 %v3035_v10, %v3850_v32  ;;  %v1693_v28 = vadd.f32 %v1616_v33, %v1449_v7  ;;  %v826_v55 = vadd.f32 %v750_v5, %v581_v49  ;;  %v1861_v35 = vrot.slane %v1742_v62, 2  ;;  %v4008_v33 = vld [vmem:[%s3031_s10 + $0x158] sm:$0xff] }
  0xe2   : > { %v386_v53 = vmul.f32 %v3035_v10, %v3853_v12  ;;  %v337_v22 = vmul.f32 %v3033_v9, %v3850_v32  ;;  %v630_v21 = vmul.f32 %v3037_v11, %v3850_v32  ;;  %v631_v39 = vmul.f32 %v3037_v11, %v3853_v12 }
  0xe3   : > { %v506_v0 = vrot.slane %v385_v48, 1  ;;  %v1937_v19 = vadd.f32 %v1860_v63, %v1693_v28  ;;  %v894_v26 = vadd.f32 %v862_v57, %v826_v55  ;;  %v863_v37 = vmul.f32 %v3041_v14, %v3923_v44 }
  0xe4   : > { %v507_v40 = vrot.slane %v386_v53, 1  ;;  %v751_v43 = vrot.slane %v630_v21, 2  ;;  %v752_v31 = vrot.slane %v631_v39, 2  ;;  %v943_v18 = vmul.f32 %v3043_v15, %v3923_v44 }
  0xe5   : > { %v944_v54 = vmul.f32 %v3043_v15, %v3926_v13  ;;  %2810 = vmatprep.mubr.msk.f32.mxu0 %vm1955_vm3, %v1937_v19  ;;  %v1138_v32 = vadd.f32 %v1062_v47, %v894_v26  ;;  %v1187_v20 = vmul.f32 %v3045_v16, %v3923_v44  ;;  %v1188_v46 = vmul.f32 %v3045_v16, %v3926_v13 }
  0xe6   : > { %v508_v60 = vsel %vm445_vm1, %v506_v0, %v507_v40  ;;  %v753_v24 = vsel %vm690_vm2, %v751_v43, %v752_v31  ;;  %v1063_v52 = vrot.slane %v943_v18, 1  ;;  %v1618_v29 = vsel %vm445_vm1, %v1615_v56, %v1617_v59  ;;  %v4036_v0 = vld [vmem:[%s3031_s10 + $0x160] sm:$0x3] }
  0xe7   : > { %v582_v3 = vadd.f32 %v508_v60, %v337_v22  ;;  %v1064_v41 = vrot.slane %v944_v54, 1  ;;  %v1382_v1 = vadd.f32 %v1306_v38, %v1138_v32  ;;  %v1307_v6 = vrot.slane %v1187_v20, 2 }
  0xe8   : > { %v1308_v25 = vrot.slane %v1188_v46, 2  ;;  %v1862_v45 = vsel %vm690_vm2, %v1859_v58, %v1861_v35  ;;  %v1499_v57 = vmul.f32 %v3058_v23, %v4005_v8  ;;  %v1500_v2 = vmul.f32 %v3058_v23, %v4008_v33 }
  0xe9   : > { %v827_v42 = vadd.f32 %v753_v24, %v582_v3  ;;  %v1450_v61 = vadd.f32 %v1418_v51, %v1382_v1  ;;  %v1065_v27 = vsel %vm445_vm1, %v1063_v52, %v1064_v41  ;;  %v1743_v56 = vmul.f32 %v3088_v50, %v4005_v8 }
  0xea   : > { %v4020_v4 = vmul.f32 %v3088_v50, %v4008_v33  ;;  %v1419_v58 = vmul.f32 %v3047_v17, %v4005_v8  ;;  %v1619_v30 = vrot.slane %v1499_v57, 1  ;;  %v1620_v62 = vrot.slane %v1500_v2, 1 }
  0xeb   : > { %v895_v5 = vadd.f32 %v863_v37, %v827_v42  ;;  %v1694_v7 = vadd.f32 %v1618_v29, %v1450_v61  ;;  %v1309_v63 = vsel %vm690_vm2, %v1307_v6, %v1308_v25  ;;  %v338_v49 = vmul.f32 %v3033_v9, %v3853_v12 }
  0xec   : > { %v387_v51 = vmul.f32 %v3035_v10, %v3881_v36  ;;  %v1863_v38 = vrot.slane %v1743_v56, 2  ;;  %v1864_v59 = vrot.slane %v4020_v4, 2  ;;  %v632_v48 = vmul.f32 %v3037_v11, %v3881_v36 }
  0xed   : > { %v1139_v47 = vadd.f32 %v1065_v27, %v895_v5  ;;  %v1938_v28 = vadd.f32 %v1862_v45, %v1694_v7  ;;  %v1621_v55 = vsel %vm445_vm1, %v1619_v30, %v1620_v62  ;;  %v945_v53 = vmul.f32 %v3043_v15, %v3960_v34 }
  0xee   : > { %v509_v35 = vrot.slane %v387_v51, 1  ;;  %v754_v12 = vrot.slane %v632_v48, 2  ;;  %v864_v21 = vmul.f32 %v3041_v14, %v3926_v13  ;;  %v1189_v39 = vmul.f32 %v3045_v16, %v3960_v34  ;;  %v4078_v51 = vld [vmem:[%s3031_s10 + $0x168] sm:$0xff] }
  0xef   : > { %v1383_v22 = vadd.f32 %v1309_v63, %v1139_v47  ;;  %2811 = vmatmul.mubr.msk.f32.gmra.mrb[22].mxu0 %vm1955_vm3, %v1938_v28  ;;  %v1066_v19 = vrot.slane %v945_v53, 1  ;;  %v1501_v26 = vmul.f32 %v3058_v23, %v4036_v0  ;;  %v1745_v37 = vmul.f32 %v3088_v50, %v4036_v0  ;;  %v4081_v47 = vld [vmem:[%s3031_s10 + $0x170] sm:$0xff] }
  0xf0   : > { %v510_v36 = vsel %vm445_vm1, %v507_v40, %v509_v35  ;;  %v755_v54 = vsel %vm690_vm2, %v752_v31, %v754_v12  ;;  %v1310_v32 = vrot.slane %v1189_v39, 2  ;;  %v1865_v60 = vsel %vm690_vm2, %v1863_v38, %v1864_v59 }
  0xf1   : > { %v1451_v43 = vadd.f32 %v1419_v58, %v1383_v22  ;;  %v583_v18 = vadd.f32 %v510_v36, %v338_v49  ;;  %v1067_v20 = vsel %vm445_vm1, %v1064_v41, %v1066_v19  ;;  %v1420_v46 = vmul.f32 %v3047_v17, %v4008_v33 }
  0xf2   : > { %v1622_v40 = vrot.slane %v1501_v26, 1  ;;  %v1866_v52 = vrot.slane %v1745_v37, 2  ;;  %v388_v1 = vmul.f32 %v3035_v10, %v3923_v44  ;;  %v1311_v29 = vsel %vm690_vm2, %v1308_v25, %v1310_v32 }
  0xf3   : > { %v1695_v3 = vadd.f32 %v1621_v55, %v1451_v43  ;;  %v828_v24 = vadd.f32 %v755_v54, %v583_v18  ;;  %v339_v31 = vmul.f32 %v3033_v9, %v3923_v44  ;;  %v389_v6 = vmul.f32 %v3035_v10, %v3926_v13 }
  0xf4   : > { %v633_v41 = vmul.f32 %v3037_v11, %v3923_v44  ;;  %v511_v57 = vrot.slane %v388_v1, 1  ;;  %v634_v2 = vmul.f32 %v3037_v11, %v3926_v13  ;;  %v1623_v61 = vsel %vm445_vm1, %v1620_v62, %v1622_v40 }
  0xf5   : > { %v1939_v45 = vadd.f32 %v1865_v60, %v1695_v3  ;;  %v896_v42 = vadd.f32 %v864_v21, %v828_v24  ;;  %v512_v25 = vrot.slane %v389_v6, 1  ;;  %v946_v56 = vmul.f32 %v3043_v15, %v4005_v8 }
  0xf6   : > { %v756_v27 = vrot.slane %v633_v41, 2  ;;  %v757_v5 = vrot.slane %v634_v2, 2  ;;  %v947_v44 = vmul.f32 %v3043_v15, %v4008_v33  ;;  %v1190_v58 = vmul.f32 %v3045_v16, %v4005_v8 }
  0xf7   : > { %2813 = vmatprep.mubr.msk.f32.mxu0 %vm1955_vm3, %v1939_v45  ;;  %v1140_v4 = vadd.f32 %v1067_v20, %v896_v42  ;;  %v513_v30 = vsel %vm445_vm1, %v511_v57, %v512_v25  ;;  %v865_v62 = vmul.f32 %v3041_v14, %v4005_v8  ;;  %v1068_v7 = vrot.slane %v946_v56, 1 }
  0xf8   : > { %v1191_v63 = vmul.f32 %v3045_v16, %v4008_v33  ;;  %v584_v38 = vadd.f32 %v513_v30, %v339_v31  ;;  %v758_v48 = vsel %vm690_vm2, %v756_v27, %v757_v5  ;;  %v1069_v28 = vrot.slane %v947_v44, 1  ;;  %v4115_v31 = vld [vmem:[%s3031_s10 + $0x178] sm:$0x3] }
  0xf9   : > { %v1384_v49 = vadd.f32 %v1311_v29, %v1140_v4  ;;  %v1312_v55 = vrot.slane %v1190_v58, 2  ;;  %v1502_v53 = vmul.f32 %v3058_v23, %v4078_v51  ;;  %v4088_v22 = vmul.f32 %v3058_v23, %v4081_v47 }
  0xfa   : > { %v1313_v35 = vrot.slane %v1191_v63, 2  ;;  %v1867_v21 = vsel %vm690_vm2, %v1864_v59, %v1866_v52  ;;  %v829_v39 = vadd.f32 %v758_v48, %v584_v38  ;;  %v1746_v36 = vmul.f32 %v3088_v50, %v4078_v51 }
  0xfb   : > { %v1452_v12 = vadd.f32 %v1420_v46, %v1384_v49  ;;  %v1070_v19 = vsel %vm445_vm1, %v1068_v7, %v1069_v28  ;;  %v1624_v26 = vrot.slane %v1502_v53, 1  ;;  %v1625_v37 = vrot.slane %v4088_v22, 1 }
  0xfc   : > { %v4097_v43 = vmul.f32 %v3088_v50, %v4081_v47  ;;  %v897_v54 = vadd.f32 %v865_v62, %v829_v39  ;;  %v1314_v32 = vsel %vm690_vm2, %v1312_v55, %v1313_v35  ;;  %v1421_v59 = vmul.f32 %v3047_v17, %v4078_v51 }
  0xfd   : > { %v1696_v18 = vadd.f32 %v1623_v61, %v1452_v12  ;;  %v1868_v60 = vrot.slane %v1746_v36, 2  ;;  %v340_v20 = vmul.f32 %v3033_v9, %v3926_v13  ;;  %v390_v46 = vmul.f32 %v3035_v10, %v3960_v34 }
  0xfe   : > { %v635_v40 = vmul.f32 %v3037_v11, %v3960_v34  ;;  %v1141_v24 = vadd.f32 %v1070_v19, %v897_v54  ;;  %v1869_v52 = vrot.slane %v4097_v43, 2  ;;  %v948_v1 = vmul.f32 %v3043_v15, %v4036_v0 }
  0xff   : > { %v1940_v3 = vadd.f32 %v1867_v21, %v1696_v18  ;;  %v1626_v29 = vsel %vm445_vm1, %v1624_v26, %v1625_v37  ;;  %v514_v13 = vrot.slane %v390_v46, 1  ;;  %v1192_v41 = vmul.f32 %v3045_v16, %v4036_v0 }
 0x100   : > { %v759_v6 = vrot.slane %v635_v40, 2  ;;  %v1385_v34 = vadd.f32 %v1314_v32, %v1141_v24  ;;  %v866_v45 = vmul.f32 %v3041_v14, %v4008_v33  ;;  %v1071_v42 = vrot.slane %v948_v1, 1  ;;  %v4124_v2 = vpop.f32.mrb[0].mxu0 }
 0x101   : > { %2814 = vmatmul.mubr.msk.f32.gmra.mrb[24].mxu0 %vm1955_vm3, %v1940_v3  ;;  %v1504_v57 = vmul.f32 %v3058_v23, %v4115_v31  ;;  %v515_v61 = vsel %vm445_vm1, %v512_v25, %v514_v13  ;;  %v1315_v56 = vrot.slane %v1192_v41, 2  ;;  %v1748_v4 = vmul.f32 %v3088_v50, %v4115_v31  ;;  %v4130_v44 = vpop.f32.mrb[1].mxu0  ;;  %v4164_v13 = vld [vmem:[%s3031_s10 + $0x180] sm:$0xff] }
 0x102   : > { %v760_v27 = vsel %vm690_vm2, %v757_v5, %v759_v6  ;;  %v1453_v58 = vadd.f32 %v1421_v59, %v1385_v34  ;;  %v1870_v30 = vsel %vm690_vm2, %v1868_v60, %v1869_v52  ;;  %v585_v62 = vadd.f32 %v515_v61, %v340_v20  ;;  %v4167_v6 = vld [vmem:[%s3031_s10 + $0x188] sm:$0xff] }
 0x103   : > { %v1422_v7 = vmul.f32 %v3047_v17, %v4081_v47  ;;  %v1072_v63 = vsel %vm445_vm1, %v1069_v28, %v1071_v42  ;;  %v1316_v49 = vsel %vm690_vm2, %v1313_v35, %v1315_v56  ;;  %v1627_v25 = vrot.slane %v1504_v57, 1 }
 0x104   : > { %v391_v5 = vmul.f32 %v3035_v10, %v4005_v8  ;;  %v1697_v38 = vadd.f32 %v1626_v29, %v1453_v58  ;;  %v830_v48 = vadd.f32 %v760_v27, %v585_v62  ;;  %v1871_v55 = vrot.slane %v1748_v4, 2 }
 0x105   : > { %v392_v53 = vmul.f32 %v3035_v10, %v4008_v33  ;;  %v341_v12 = vmul.f32 %v3033_v9, %v4005_v8  ;;  %v636_v39 = vmul.f32 %v3037_v11, %v4005_v8  ;;  %v637_v28 = vmul.f32 %v3037_v11, %v4008_v33 }
 0x106   : > { %v516_v21 = vrot.slane %v391_v5, 1  ;;  %v1941_v35 = vadd.f32 %v1870_v30, %v1697_v38  ;;  %v898_v36 = vadd.f32 %v866_v45, %v830_v48  ;;  %v867_v26 = vmul.f32 %v3041_v14, %v4078_v51 }
 0x107   : > { %v517_v19 = vrot.slane %v392_v53, 1  ;;  %v761_v43 = vrot.slane %v636_v39, 2  ;;  %v762_v18 = vrot.slane %v637_v28, 2  ;;  %v949_v54 = vmul.f32 %v3043_v15, %v4078_v51  ;;  %v4195_v28 = vld [vmem:[%s3031_s10 + $0x190] sm:$0x3] }
 0x108   : > { %v950_v32 = vmul.f32 %v3043_v15, %v4081_v47  ;;  %2816 = vmatprep.mubr.msk.f32.mxu0 %vm1955_vm3, %v1941_v35  ;;  %v1142_v8 = vadd.f32 %v1072_v63, %v898_v36  ;;  %v1193_v60 = vmul.f32 %v3045_v16, %v4078_v51  ;;  %v1194_v20 = vmul.f32 %v3045_v16, %v4081_v47 }
 0x109   : > { %v518_v59 = vsel %vm445_vm1, %v516_v21, %v517_v19  ;;  %v763_v40 = vsel %vm690_vm2, %v761_v43, %v762_v18  ;;  %v1073_v3 = vrot.slane %v949_v54, 1  ;;  %v1628_v29 = vsel %vm445_vm1, %v1625_v37, %v1627_v25 }
 0x10a   : > { %v586_v46 = vadd.f32 %v518_v59, %v341_v12  ;;  %v1074_v24 = vrot.slane %v950_v32, 1  ;;  %v1386_v1 = vadd.f32 %v1316_v49, %v1142_v8  ;;  %v1317_v41 = vrot.slane %v1193_v60, 2 }
 0x10b   : > { %v1318_v34 = vrot.slane %v1194_v20, 2  ;;  %v1872_v45 = vsel %vm690_vm2, %v1869_v52, %v1871_v55  ;;  %v1505_v57 = vmul.f32 %v3058_v23, %v4164_v13  ;;  %v1506_v61 = vmul.f32 %v3058_v23, %v4167_v6 }
 0x10c   : > { %v831_v42 = vadd.f32 %v763_v40, %v586_v46  ;;  %v1454_v27 = vadd.f32 %v1422_v7, %v1386_v1  ;;  %v1075_v22 = vsel %vm445_vm1, %v1073_v3, %v1074_v24  ;;  %v1749_v37 = vmul.f32 %v3088_v50, %v4164_v13 }
 0x10d   : > { %v4179_v56 = vmul.f32 %v3088_v50, %v4167_v6  ;;  %v1423_v52 = vmul.f32 %v3047_v17, %v4164_v13  ;;  %v1629_v58 = vrot.slane %v1505_v57, 1  ;;  %v1630_v30 = vrot.slane %v1506_v61, 1 }
 0x10e   : > { %v899_v4 = vadd.f32 %v867_v26, %v831_v42  ;;  %v1698_v62 = vadd.f32 %v1628_v29, %v1454_v27  ;;  %v1319_v63 = vsel %vm690_vm2, %v1317_v41, %v1318_v34  ;;  %v342_v7 = vmul.f32 %v3033_v9, %v4008_v33 }
 0x10f   : > { %v393_v49 = vmul.f32 %v3035_v10, %v4036_v0  ;;  %v1873_v5 = vrot.slane %v1749_v37, 2  ;;  %v1874_v38 = vrot.slane %v4179_v56, 2  ;;  %v638_v48 = vmul.f32 %v3037_v11, %v4036_v0 }
 0x110   : > { %v1143_v25 = vadd.f32 %v1075_v22, %v899_v4  ;;  %v1942_v55 = vadd.f32 %v1872_v45, %v1698_v62  ;;  %v1631_v53 = vsel %vm445_vm1, %v1629_v58, %v1630_v30  ;;  %v951_v21 = vmul.f32 %v3043_v15, %v4115_v31 }
 0x111   : > { %v519_v12 = vrot.slane %v393_v49, 1  ;;  %v764_v33 = vrot.slane %v638_v48, 2  ;;  %v868_v35 = vmul.f32 %v3041_v14, %v4081_v47  ;;  %v1195_v36 = vmul.f32 %v3045_v16, %v4115_v31  ;;  %v4235_v49 = vld [vmem:[%s3031_s10 + $0x1a0] sm:$0xff] }
 0x112   : > { %v1387_v39 = vadd.f32 %v1319_v63, %v1143_v25  ;;  %2817 = vmatmul.mubr.msk.f32.gmra.mrb[26].mxu0 %vm1955_vm3, %v1942_v55  ;;  %v1076_v26 = vrot.slane %v951_v21, 1  ;;  %v1507_v43 = vmul.f32 %v3058_v23, %v4195_v28  ;;  %v1751_v54 = vmul.f32 %v3088_v50, %v4195_v28 }
 0x113   : > { %v520_v0 = vsel %vm445_vm1, %v517_v19, %v519_v12  ;;  %v765_v59 = vsel %vm690_vm2, %v762_v18, %v764_v33  ;;  %v1320_v60 = vrot.slane %v1195_v36, 2  ;;  %v4208_v20 = vpop.f32.mrb[2].mxu0  ;;  %v1875_v46 = vsel %vm690_vm2, %v1873_v5, %v1874_v38 }
 0x114   : > { %v1455_v32 = vadd.f32 %v1423_v52, %v1387_v39  ;;  %v587_v8 = vadd.f32 %v520_v0, %v342_v7  ;;  %v1077_v19 = vsel %vm445_vm1, %v1074_v24, %v1076_v26  ;;  %v1424_v40 = vmul.f32 %v3047_v17, %v4167_v6  ;;  %v4216_v1 = vpop.f32.mrb[3].mxu0  ;;  %v303_v7 = vld [vmem:[%s3031_s10 + $0x198] sm:$0xff] }
 0x115   : > { %v1632_v3 = vrot.slane %v1507_v43, 1  ;;  %v1876_v45 = vrot.slane %v1751_v54, 2  ;;  %v394_v18 = vmul.f32 %v3035_v10, %v4078_v51  ;;  %v1321_v42 = vsel %vm690_vm2, %v1318_v34, %v1320_v60 }
 0x116   : > { %v1699_v29 = vadd.f32 %v1631_v53, %v1455_v32  ;;  %v832_v41 = vadd.f32 %v765_v59, %v587_v8  ;;  %v343_v57 = vmul.f32 %v3033_v9, %v4078_v51  ;;  %v395_v24 = vmul.f32 %v3035_v10, %v4081_v47 }
 0x117   : > { %v639_v61 = vmul.f32 %v3037_v11, %v4078_v51  ;;  %v521_v37 = vrot.slane %v394_v18, 1  ;;  %v640_v4 = vmul.f32 %v3037_v11, %v4081_v47  ;;  %v1633_v52 = vsel %vm445_vm1, %v1630_v30, %v1632_v3 }
 0x118   : > { %v1943_v27 = vadd.f32 %v1875_v46, %v1699_v29  ;;  %v900_v22 = vadd.f32 %v868_v35, %v832_v41  ;;  %v522_v58 = vrot.slane %v395_v24, 1  ;;  %v952_v34 = vmul.f32 %v3043_v15, %v4164_v13 }
 0x119   : > { %v766_v62 = vrot.slane %v639_v61, 2  ;;  %v767_v51 = vrot.slane %v640_v4, 2  ;;  %v4239_v25 = vmul.f32 %v3043_v15, %v4167_v6  ;;  %v1196_v5 = vmul.f32 %v3045_v16, %v4164_v13  ;;  %v305_v61 = vld [vmem:[%s3031_s10 + $0x1a8] sm:$0x3] }
 0x11a   : > { %2819 = vmatprep.mubr.msk.f32.mxu0 %vm1955_vm3, %v1943_v27  ;;  %v1144_v63 = vadd.f32 %v1077_v19, %v900_v22  ;;  %v523_v30 = vsel %vm445_vm1, %v521_v37, %v522_v58  ;;  %v869_v48 = vmul.f32 %v3041_v14, %v4164_v13  ;;  %v1078_v55 = vrot.slane %v952_v34, 1 }
 0x11b   : > { %v4248_v53 = vmul.f32 %v3045_v16, %v4167_v6  ;;  %v588_v21 = vadd.f32 %v523_v30, %v343_v57  ;;  %v768_v39 = vsel %vm690_vm2, %v766_v62, %v767_v51  ;;  %v1079_v33 = vrot.slane %v4239_v25, 1 }
 0x11c   : > { %v1388_v12 = vadd.f32 %v1321_v42, %v1144_v63  ;;  %v1322_v35 = vrot.slane %v1196_v5, 2  ;;  %v1508_v0 = vmul.f32 %v3058_v23, %v303_v7  ;;  %v4256_v26 = vmul.f32 %v3058_v23, %v4235_v49 }
 0x11d   : > { %v1323_v36 = vrot.slane %v4248_v53, 2  ;;  %v1877_v43 = vsel %vm690_vm2, %v1874_v38, %v1876_v45  ;;  %v833_v54 = vadd.f32 %v768_v39, %v588_v21  ;;  %v1752_v32 = vmul.f32 %v3088_v50, %v303_v7 }
 0x11e   : > { %v1456_v13 = vadd.f32 %v1424_v40, %v1388_v12  ;;  %v1080_v8 = vsel %vm445_vm1, %v1078_v55, %v1079_v33  ;;  %v1425_v60 = vmul.f32 %v3047_v17, %v303_v7  ;;  %v4267_v46 = vmul.f32 %v3088_v50, %v4235_v49  ;;  %v2318_v12 = vld [vmem:[%s4508_s4 + $0x28] sm:$0xff] }
 0x11f   : > { %v1324_v59 = vsel %vm690_vm2, %v1322_v35, %v1323_v36  ;;  %v901_v40 = vadd.f32 %v869_v48, %v833_v54  ;;  %v1634_v3 = vrot.slane %v1508_v0, 1  ;;  %v1635_v56 = vrot.slane %v4256_v26, 1 }
 0x120   : > { %v1700_v19 = vadd.f32 %v1633_v52, %v1456_v13  ;;  %v1878_v38 = vrot.slane %v1752_v32, 2  ;;  %v344_v29 = vmul.f32 %v3033_v9, %v4081_v47  ;;  %v396_v41 = vmul.f32 %v3035_v10, %v4115_v31  ;;  %v2313_v9 = vld [vmem:[%s4508_s4] sm:$0xff]  ;;  %v2316_v47 = vld [vmem:[%s4508_s4 + $0x18] sm:$0xff] }
 0x121   : > { %v641_v45 = vmul.f32 %v3037_v11, %v4115_v31  ;;  %v1145_v42 = vadd.f32 %v1080_v8, %v901_v40  ;;  %v1879_v57 = vrot.slane %v4267_v46, 2  ;;  %v954_v24 = vmul.f32 %v3043_v15, %v4195_v28  ;;  %v2314_v11 = vld [vmem:[%s4508_s4 + $0x8] sm:$0xff]  ;;  %v2315_v15 = vld [vmem:[%s4508_s4 + $0x10] sm:$0xff]  ;;  %v2320_v13 = vld [vmem:[%s4508_s4 + $0x38] sm:$0xff] }
 0x122   : > { %v1944_v18 = vadd.f32 %v1877_v43, %v1700_v19  ;;  %v524_v27 = vrot.slane %v396_v41, 1  ;;  %v1198_v37 = vmul.f32 %v3045_v16, %v4195_v28  ;;  %v1636_v16 = vsel %vm445_vm1, %v1634_v3, %v1635_v56  ;;  %v2322_v46 = vld [vmem:[%s4508_s4 + $0x48] sm:$0xff] }
 0x123   : > { %v769_v22 = vrot.slane %v641_v45, 2  ;;  %v1389_v10 = vadd.f32 %v1324_v59, %v1145_v42  ;;  %v1081_v4 = vrot.slane %v954_v24, 1  ;;  %v1880_v34 = vsel %vm690_vm2, %v1878_v38, %v1879_v57  ;;  %v2324_v38 = vld [vmem:[%s4508_s4 + $0x58] sm:$0xff]  ;;  %v2326_v42 = vld [vmem:[%s4508_s4 + $0x68] sm:$0xff] }
 0x124   : > { %2820 = vmatmul.mubr.msk.f32.gmra.mrb[28].mxu0 %vm1955_vm3, %v1944_v18  ;;  %v525_v31 = vsel %vm445_vm1, %v522_v58, %v524_v27  ;;  %v870_v7 = vmul.f32 %v3041_v14, %v4167_v6  ;;  %v1325_v5 = vrot.slane %v1198_v37, 2  ;;  %v1510_v30 = vmul.f32 %v3058_v23, %v305_v61  ;;  %v2325_v18 = vld [vmem:[%s4508_s4 + $0x60] sm:$0xff]  ;;  %v2327_v27 = vld [vmem:[%s4508_s4 + $0x70] sm:$0xff] }
 0x125   : > { %v770_v28 = vsel %vm690_vm2, %v767_v51, %v769_v22  ;;  %v4298_v52 = vpop.f32.mrb[4].mxu0  ;;  %v1457_v62 = vadd.f32 %v1425_v60, %v1389_v10  ;;  %v589_v63 = vadd.f32 %v525_v31, %v344_v29  ;;  %v2905_v48 = vpack.c.bf16 %v2314_v11, %v2313_v9  ;;  %v2317_v51 = vld [vmem:[%s4508_s4 + $0x20] sm:$0xff]  ;;  %v2328_v22 = vld [vmem:[%s4508_s4 + $0x78] sm:$0xff] }
 0x126   : > { %v4303_v25 = vpop.f32.mrb[5].mxu0  ;;  %v2909_v55 = vpack.c.bf16 %v2316_v47, %v2315_v15  ;;  %v1082_v21 = vsel %vm445_vm1, %v1079_v33, %v1081_v4  ;;  %v1754_v14 = vmul.f32 %v3088_v50, %v305_v61  ;;  %v1326_v39 = vsel %vm690_vm2, %v1323_v36, %v1325_v5  ;;  %v2319_v50 = vld [vmem:[%s4508_s4 + $0x30] sm:$0xff]  ;;  %v4327_v36 = vld [vmem:[%s4507_s3] ss:$0 sm:$0xff] }
 0x127   : > { %v1701_v58 = vadd.f32 %v1636_v16, %v1457_v62  ;;  %v834_v53 = vadd.f32 %v770_v28, %v589_v63  ;;  %2906 = vmatprep.subr.bf16.mxu0 %v2905_v48  ;;  %2937 = vmatprep.subr.bf16.mxu1 %v2905_v48  ;;  %v1637_v35 = vrot.slane %v1510_v30, 1  ;;  %v2913_v0 = vpack.c.bf16 %v2318_v12, %v2317_v51  ;;  %v2321_v60 = vld [vmem:[%s4508_s4 + $0x40] sm:$0xff] }
 0x128   : > { %2908 = vmatpush3.bf16.msra.mxu0 %v2905_v48  ;;  %2945 = vmatpush3.bf16.msra.mxu1 %v2905_v48  ;;  %v1426_v33 = vmul.f32 %v3047_v17, %v4235_v49  ;;  %v1881_v43 = vrot.slane %v1754_v14, 2  ;;  %v2917_v17 = vpack.c.bf16 %v2320_v13, %v2319_v50  ;;  %v2123_v8 = vadd.f32 %v4327_v36, %v4130_v44  ;;  %v2323_v44 = vld [vmem:[%s4508_s4 + $0x50] sm:$0xff] }
 0x129   : > { %v1945_v6 = vadd.f32 %v1880_v34, %v1701_v58  ;;  %v902_v23 = vadd.f32 %v870_v7, %v834_v53  ;;  %2910 = vmatprep.subr.bf16.mxu0 %v2909_v55  ;;  %2938 = vmatprep.subr.bf16.mxu1 %v2909_v55  ;;  %v1638_v32 = vsel %vm445_vm1, %v1635_v56, %v1637_v35 }
 0x12a   : > { %v1882_v59 = vsel %vm690_vm2, %v1879_v57, %v1881_v43  ;;  %v2921_v3 = vpack.c.bf16 %v2322_v46, %v2321_v60  ;;  %v2281_v56 = vmax.f32 %v2123_v8, 0.0  ;;  %v2925_v41 = vpack.c.bf16 %v2324_v38, %v2323_v44 }
 0x12b   : > { %2822 = vmatprep.mubr.msk.f32.mxu0 %vm1955_vm3, %v1945_v6  ;;  %v1146_v26 = vadd.f32 %v1082_v21, %v902_v23  ;;  %v2929_v61 = vpack.c.bf16 %v2326_v42, %v2325_v18  ;;  %v2933_v37 = vpack.c.bf16 %v2328_v22, %v2327_v27  ;;  %v2133_v9 = vadd.f32 %v4327_v36, %v4216_v1 }
 0x12c   : > { %2912 = vmatpush3.bf16.msra.mxu0 %v2909_v55  ;;  %2946 = vmatpush3.bf16.msra.mxu1 %v2909_v55  ;;  %v2128_v11 = vadd.f32 %v4124_v2, %v4327_v36  ;;  %v2143_v47 = vadd.f32 %v4327_v36, %v4303_v25  ;;  %v2138_v28 = vadd.f32 %v4208_v20, %v4327_v36 }
 0x12d   : > { %v1390_v54 = vadd.f32 %v1326_v39, %v1146_v26  ;;  %2914 = vmatprep.subr.bf16.mxu0 %v2913_v0  ;;  %2939 = vmatprep.subr.bf16.mxu1 %v2913_v0  ;;  %v2283_v15 = vmax.f32 %v2133_v9, 0.0  ;;  %v2148_v7 = vadd.f32 %v4298_v52, %v4327_v36 }
 0x12e   : > { %v2282_v31 = vmax.f32 %v2128_v11, 0.0  ;;  %v2285_v34 = vmax.f32 %v2143_v47, 0.0  ;;  %v2284_v63 = vmax.f32 %v2138_v28, 0.0 }
 0x12f   : > { %v1458_v49 = vadd.f32 %v1426_v33, %v1390_v54  ;;  %v2286_v20 = vmax.f32 %v2148_v7, 0.0 }
 0x130   : > { %2916 = vmatpush3.bf16.msra.mxu0 %v2913_v0  ;;  %2947 = vmatpush3.bf16.msra.mxu1 %v2913_v0 }
 0x131   : > { %v1702_v19 = vadd.f32 %v1638_v32, %v1458_v49  ;;  %2918 = vmatprep.subr.bf16.mxu0 %v2917_v17  ;;  %2940 = vmatprep.subr.bf16.mxu1 %v2917_v17 }
 0x133   : > { %v1946_v40 = vadd.f32 %v1882_v59, %v1702_v19 }
 0x134   : > { %2948 = vmatpush3.bf16.msra.mxu1 %v2917_v17  ;;  %2920 = vmatpush3.bf16.msra.mxu0 %v2917_v17 }
 0x135   : > { %2823 = vmatmul.mubr.msk.f32.gmra.mrb[30].mxu0 %vm1955_vm3, %v1946_v40  ;;  %2941 = vmatprep.subr.bf16.mxu1 %v2921_v3 }
 0x136   : > { %v2788_v29 = vpop.f32.mrb[6].mxu0  ;;  %2922 = vmatprep.subr.bf16.mxu0 %v2921_v3  ;;  %2857 = vmatprep.mubr.f32.mxu0 %v2281_v56 }
 0x137   : > { %v2152_v45 = vpop.f32.mrb[7].mxu0  ;;  %v2158_v10 = vadd.f32 %v2788_v29, %v4327_v36 }
 0x138   : > { %v2153_v57 = vadd.f32 %v4327_v36, %v2152_v45  ;;  %2949 = vmatpush3.bf16.msra.mxu1 %v2921_v3  ;;  %2924 = vmatpush3.bf16.msra.mxu0 %v2921_v3 }
 0x139   : > { %2942 = vmatprep.subr.bf16.mxu1 %v2925_v41  ;;  %2926 = vmatprep.subr.bf16.mxu0 %v2925_v41  ;;  %v2288_v16 = vmax.f32 %v2158_v10, 0.0 }
 0x13a   : > { %v2287_v24 = vmax.f32 %v2153_v57, 0.0 }
 0x13c   : > { %2866 = vmatprep.mubr.f32.mxu1 %v2287_v24  ;;  %2950 = vmatpush3.bf16.msra.mxu1 %v2925_v41 }
 0x13d   : > { %2928 = vmatpush3.bf16.msra.mxu0 %v2925_v41  ;;  %2943 = vmatprep.subr.bf16.mxu1 %v2929_v61 }
 0x13e   : > { %2930 = vmatprep.subr.bf16.mxu0 %v2929_v61 }
 0x140   : > { %2951 = vmatpush3.bf16.msra.mxu1 %v2929_v61 }
 0x141   : > { %2932 = vmatpush3.bf16.msra.mxu0 %v2929_v61  ;;  %2944 = vmatprep.subr.bf16.mxu1 %v2933_v37 }
 0x142   : > { %2934 = vmatprep.subr.bf16.mxu0 %v2933_v37 }
 0x144   : > { %2952 = vmatpush3.bf16.msra.mxu1 %v2933_v37 }
 0x145   : > { %2936 = vmatpush3.bf16.msra.mxu0 %v2933_v37 }
 0x147   : > { %2867 = vmatmul.mubr.f32.vlgmr.msra.gmra.mrb[0].mxu1 %v2288_v16 }
 0x148   : > { %v2791_v4 = vpop.f32.mrb[8].mxu0  ;;  %2858 = vmatmul.mubr.f32.vlgmr.msra.gmra.mrb[32].mxu0 %v2282_v31 }
 0x149   : > { %v2168_v1 = vadd.f32 %v2791_v4, %v4327_v36  ;;  %v2162_v62 = vpop.f32.mrb[9].mxu0  ;;  %2860 = vmatprep.mubr.f32.mxu0 %v2283_v15 }
 0x14a   : > { %v2163_v2 = vadd.f32 %v4327_v36, %v2162_v62 }
 0x14b   : > { %v2290_v5 = vmax.f32 %v2168_v1, 0.0 }
 0x14c   : > { %v2289_v25 = vmax.f32 %v2163_v2, 0.0  ;;  %2861 = vmatmul.mubr.f32.gmra.mrb[34].mxu0 %v2284_v63 }
 0x14d   : > { %2863 = vmatprep.mubr.f32.mxu0 %v2285_v34 }
 0x14e   : > { %2869 = vmatprep.mubr.f32.mxu1 %v2289_v25 }
 0x14f   : > { %2870 = vmatmul.mubr.f32.gmra.mrb[2].mxu1 %v2290_v5 }
 0x150   : > { %2864 = vmatmul.mubr.f32.gmra.mrb[36].mxu0 %v2286_v20 }
 0x159   : > { %v2794_v30 = vpop.f32.mrb[10].mxu0 }
 0x15a   : > { %v2178_v48 = vadd.f32 %v2794_v30, %v4327_v36  ;;  %v2172_v55 = vpop.f32.mrb[11].mxu0 }
 0x15b   : > { %v2173_v58 = vadd.f32 %v4327_v36, %v2172_v55 }
 0x15c   : > { %v2292_v51 = vmax.f32 %v2178_v48, 0.0 }
 0x15d   : > { %v2291_v53 = vmax.f32 %v2173_v58, 0.0  ;;  %v4398_v58 = vld [vmem:[%s4509_s5] ss:$0 sm:$0xff] }
 0x15f   : > { %2872 = vmatprep.mubr.f32.mxu1 %v2291_v53 }
 0x160   : > { %2873 = vmatmul.mubr.f32.gmra.mrb[4].mxu1 %v2292_v51 }
 0x16b   : > { %v2797_v12 = vpop.f32.mrb[12].mxu0 }
 0x16c   : > { %v2188_v52 = vadd.f32 %v2797_v12, %v4327_v36  ;;  %v2182_v21 = vpop.f32.mrb[13].mxu0 }
 0x16d   : > { %v2183_v14 = vadd.f32 %v4327_v36, %v2182_v21 }
 0x16e   : > { %v2294_v23 = vmax.f32 %v2188_v52, 0.0 }
 0x16f   : > { %v2293_v6 = vmax.f32 %v2183_v14, 0.0 }
 0x171   : > { %2875 = vmatprep.mubr.f32.mxu1 %v2293_v6 }
 0x172   : > { %2876 = vmatmul.mubr.f32.gmra.mrb[6].mxu1 %v2294_v23 }
 0x17c   : > { %v2800_v39 = vpop.f32.mrb[14].mxu0 }
 0x17d   : > { %v2198_v35 = vadd.f32 %v2800_v39, %v4327_v36  ;;  %v2192_v0 = vpop.f32.mrb[15].mxu0 }
 0x17e   : > { %v2193_v26 = vadd.f32 %v4327_v36, %v2192_v0 }
 0x17f   : > { %v2296_v50 = vmax.f32 %v2198_v35, 0.0 }
 0x180   : > { %v2295_v33 = vmax.f32 %v2193_v26, 0.0 }
 0x182   : > { %2878 = vmatprep.mubr.f32.mxu1 %v2295_v33 }
 0x183   : > { %2879 = vmatmul.mubr.f32.gmra.mrb[8].mxu1 %v2296_v50 }
 0x18e   : > { %v2803_v13 = vpop.f32.mrb[16].mxu0 }
 0x18f   : > { %v2208_v43 = vadd.f32 %v2803_v13, %v4327_v36  ;;  %v2202_v54 = vpop.f32.mrb[17].mxu0 }
 0x190   : > { %v2203_v32 = vadd.f32 %v4327_v36, %v2202_v54 }
 0x191   : > { %v2298_v49 = vmax.f32 %v2208_v43, 0.0 }
 0x192   : > { %v2297_v17 = vmax.f32 %v2203_v32, 0.0 }
 0x194   : > { %2881 = vmatprep.mubr.f32.mxu1 %v2297_v17 }
 0x195   : > { %2882 = vmatmul.mubr.f32.gmra.mrb[10].mxu1 %v2298_v49 }
 0x19f   : > { %v2806_v8 = vpop.f32.mrb[18].mxu0 }
 0x1a0   : > { %v2218_v59 = vadd.f32 %v2806_v8, %v4327_v36  ;;  %v2212_v60 = vpop.f32.mrb[19].mxu0 }
 0x1a1   : > { %v2213_v46 = vadd.f32 %v4327_v36, %v2212_v60 }
 0x1a2   : > { %v2300_v40 = vmax.f32 %v2218_v59, 0.0 }
 0x1a3   : > { %v2299_v19 = vmax.f32 %v2213_v46, 0.0 }
 0x1a5   : > { %2884 = vmatprep.mubr.f32.mxu1 %v2299_v19 }
 0x1a6   : > { %2885 = vmatmul.mubr.f32.gmra.mrb[12].mxu1 %v2300_v40 }
 0x1b1   : > { %v2809_v3 = vpop.f32.mrb[20].mxu0 }
 0x1b2   : > { %v2228_v56 = vadd.f32 %v2809_v3, %v4327_v36  ;;  %v2222_v44 = vpop.f32.mrb[21].mxu0 }
 0x1b3   : > { %v2223_v38 = vadd.f32 %v4327_v36, %v2222_v44 }
 0x1b4   : > { %v2302_v41 = vmax.f32 %v2228_v56, 0.0 }
 0x1b5   : > { %v2301_v29 = vmax.f32 %v2223_v38, 0.0 }
 0x1b7   : > { %2887 = vmatprep.mubr.f32.mxu1 %v2301_v29 }
 0x1b8   : > { %2888 = vmatmul.mubr.f32.gmra.mrb[14].mxu1 %v2302_v41 }
 0x1c2   : > { %v2812_v45 = vpop.f32.mrb[22].mxu0 }
 0x1c3   : > { %v2238_v18 = vadd.f32 %v2812_v45, %v4327_v36  ;;  %v2232_v42 = vpop.f32.mrb[23].mxu0 }
 0x1c4   : > { %v2233_v57 = vadd.f32 %v4327_v36, %v2232_v42 }
 0x1c5   : > { %v2304_v61 = vmax.f32 %v2238_v18, 0.0 }
 0x1c6   : > { %v2303_v24 = vmax.f32 %v2233_v57, 0.0 }
 0x1c8   : > { %2890 = vmatprep.mubr.f32.mxu1 %v2303_v24 }
 0x1c9   : > { %2891 = vmatmul.mubr.f32.gmra.mrb[16].mxu1 %v2304_v61 }
 0x1d4   : > { %v2815_v27 = vpop.f32.mrb[24].mxu0 }
 0x1d5   : > { %v2248_v22 = vadd.f32 %v2815_v27, %v4327_v36  ;;  %v2242_v37 = vpop.f32.mrb[25].mxu0 }
 0x1d6   : > { %v2243_v9 = vadd.f32 %v4327_v36, %v2242_v37 }
 0x1d7   : > { %v2306_v11 = vmax.f32 %v2248_v22, 0.0 }
 0x1d8   : > { %v2305_v10 = vmax.f32 %v2243_v9, 0.0 }
 0x1da   : > { %2893 = vmatprep.mubr.f32.mxu1 %v2305_v10 }
 0x1db   : > { %2894 = vmatmul.mubr.f32.gmra.mrb[18].mxu1 %v2306_v11 }
 0x1e5   : > { %v2818_v15 = vpop.f32.mrb[26].mxu0 }
 0x1e6   : > { %v2258_v47 = vadd.f32 %v2818_v15, %v4327_v36  ;;  %v2252_v16 = vpop.f32.mrb[27].mxu0 }
 0x1e7   : > { %v2253_v31 = vadd.f32 %v4327_v36, %v2252_v16 }
 0x1e8   : > { %v2308_v4 = vmax.f32 %v2258_v47, 0.0 }
 0x1e9   : > { %v2307_v28 = vmax.f32 %v2253_v31, 0.0 }
 0x1eb   : > { %2896 = vmatprep.mubr.f32.mxu1 %v2307_v28 }
 0x1ec   : > { %2897 = vmatmul.mubr.f32.gmra.mrb[20].mxu1 %v2308_v4 }
 0x1f7   : > { %v2821_v1 = vpop.f32.mrb[28].mxu0 }
 0x1f8   : > { %v2268_v62 = vadd.f32 %v2821_v1, %v4327_v36  ;;  %v2262_v2 = vpop.f32.mrb[29].mxu0 }
 0x1f9   : > { %v2263_v34 = vadd.f32 %v4327_v36, %v2262_v2 }
 0x1fa   : > { %v2310_v7 = vmax.f32 %v2268_v62, 0.0 }
 0x1fb   : > { %v2309_v63 = vmax.f32 %v2263_v34, 0.0 }
 0x1fd   : > { %2899 = vmatprep.mubr.f32.mxu1 %v2309_v63 }
 0x1fe   : > { %2900 = vmatmul.mubr.f32.gmra.mrb[22].mxu1 %v2310_v7 }
 0x208   : > { %v2824_v25 = vpop.f32.mrb[30].mxu0 }
 0x209   : > { %v2278_v5 = vadd.f32 %v2824_v25, %v4327_v36  ;;  %v2272_v20 = vpop.f32.mrb[31].mxu0 }
 0x20a   : > { %v2273_v30 = vadd.f32 %v4327_v36, %v2272_v20 }
 0x20b   : > { %v2312_v55 = vmax.f32 %v2278_v5, 0.0 }
 0x20c   : > { %v2311_v48 = vmax.f32 %v2273_v30, 0.0 }
 0x20e   : > { %2902 = vmatprep.mubr.f32.mxu1 %v2311_v48 }
 0x20f   : > { %2903 = vmatmul.mubr.f32.gmra.mrb[24].mxu1 %v2312_v55 }
 0x21a   : > { %v2868_v53 = vpop.f32.mrb[0].mxu1 }
 0x21b   : > { %v2859_v36 = vpop.f32.mrb[32].mxu0  ;;  %v2438_v51 = vadd.f32 %v2868_v53, %v4398_v58  ;;  %v2432_v12 = vpop.f32.mrb[1].mxu1 }
 0x21c   : > { %v2408_v52 = vadd.f32 %v2859_v36, %v4398_v58  ;;  %v2402_v21 = vpop.f32.mrb[33].mxu0  ;;  %v2433_v14 = vadd.f32 %v4398_v58, %v2432_v12 }
 0x21d   : > { %v2403_v6 = vadd.f32 %v4398_v58, %v2402_v21  ;;  %2568 = vst.msk [vmem:[%s4403_s30 + $0x38] sm:$0xff] %vm1955_vm3, %v2438_v51 }
 0x21e   : > { %2562 = vst.msk [vmem:[%s4403_s30 + $0x8] sm:$0xff] %vm1955_vm3, %v2408_v52  ;;  %2567 = vst.msk [vmem:[%s4403_s30 + $0x30] sm:$0xff] %vm1955_vm3, %v2433_v14 }
 0x21f   : > { %2561 = vst.msk [vmem:[%s4403_s30] sm:$0xff] %vm1955_vm3, %v2403_v6  ;;  %v2862_v23 = vpop.f32.mrb[34].mxu0 }
 0x220   : > { %v2418_v39 = vadd.f32 %v2862_v23, %v4398_v58  ;;  %v2412_v35 = vpop.f32.mrb[35].mxu0 }
 0x221   : > { %v2413_v26 = vadd.f32 %v4398_v58, %v2412_v35 }
 0x222   : > { %v2871_v0 = vpop.f32.mrb[2].mxu1  ;;  %2564 = vst.msk [vmem:[%s4403_s30 + $0x18] sm:$0xff] %vm1955_vm3, %v2418_v39 }
 0x223   : > { %v2448_v33 = vadd.f32 %v2871_v0, %v4398_v58  ;;  %v2442_v50 = vpop.f32.mrb[3].mxu1  ;;  %2563 = vst.msk [vmem:[%s4403_s30 + $0x10] sm:$0xff] %vm1955_vm3, %v2413_v26  ;;  %v2865_v43 = vpop.f32.mrb[36].mxu0 }
 0x224   : > { %v2443_v13 = vadd.f32 %v4398_v58, %v2442_v50  ;;  %v2428_v54 = vadd.f32 %v2865_v43, %v4398_v58  ;;  %v2422_v32 = vpop.f32.mrb[37].mxu0 }
 0x225   : > { %2570 = vst.msk [vmem:[%s4403_s30 + $0x48] sm:$0xff] %vm1955_vm3, %v2448_v33  ;;  %v2423_v17 = vadd.f32 %v4398_v58, %v2422_v32 }
 0x226   : > { %2569 = vst.msk [vmem:[%s4403_s30 + $0x40] sm:$0xff] %vm1955_vm3, %v2443_v13  ;;  %2566 = vst.msk [vmem:[%s4403_s30 + $0x28] sm:$0xff] %vm1955_vm3, %v2428_v54 }
 0x227   : > { %2565 = vst.msk [vmem:[%s4403_s30 + $0x20] sm:$0xff] %vm1955_vm3, %v2423_v17 }
 0x233   : > { %v2874_v49 = vpop.f32.mrb[4].mxu1 }
 0x234   : > { %v2458_v8 = vadd.f32 %v2874_v49, %v4398_v58  ;;  %v2452_v59 = vpop.f32.mrb[5].mxu1 }
 0x235   : > { %v2453_v60 = vadd.f32 %v4398_v58, %v2452_v59 }
 0x236   : > { %2572 = vst.msk [vmem:[%s4403_s30 + $0x58] sm:$0xff] %vm1955_vm3, %v2458_v8 }
 0x237   : > { %2571 = vst.msk [vmem:[%s4403_s30 + $0x50] sm:$0xff] %vm1955_vm3, %v2453_v60 }
 0x245   : > { %v2877_v46 = vpop.f32.mrb[6].mxu1 }
 0x246   : > { %v2468_v19 = vadd.f32 %v2877_v46, %v4398_v58  ;;  %v2462_v40 = vpop.f32.mrb[7].mxu1 }
 0x247   : > { %v2463_v3 = vadd.f32 %v4398_v58, %v2462_v40 }
 0x248   : > { %2574 = vst.msk [vmem:[%s4403_s30 + $0x68] sm:$0xff] %vm1955_vm3, %v2468_v19 }
 0x249   : > { %2573 = vst.msk [vmem:[%s4403_s30 + $0x60] sm:$0xff] %vm1955_vm3, %v2463_v3 }
 0x256   : > { %v2880_v56 = vpop.f32.mrb[8].mxu1 }
 0x257   : > { %v2478_v44 = vadd.f32 %v2880_v56, %v4398_v58  ;;  %v2472_v38 = vpop.f32.mrb[9].mxu1 }
 0x258   : > { %v2473_v29 = vadd.f32 %v4398_v58, %v2472_v38 }
 0x259   : > { %2576 = vst.msk [vmem:[%s4403_s30 + $0x78] sm:$0xff] %vm1955_vm3, %v2478_v44 }
 0x25a   : > { %2575 = vst.msk [vmem:[%s4403_s30 + $0x70] sm:$0xff] %vm1955_vm3, %v2473_v29 }
 0x268   : > { %v2883_v41 = vpop.f32.mrb[10].mxu1 }
 0x269   : > { %v2488_v45 = vadd.f32 %v2883_v41, %v4398_v58  ;;  %v2482_v18 = vpop.f32.mrb[11].mxu1 }
 0x26a   : > { %v2483_v42 = vadd.f32 %v4398_v58, %v2482_v18 }
 0x26b   : > { %2578 = vst.msk [vmem:[%s4403_s30 + $0x88] sm:$0xff] %vm1955_vm3, %v2488_v45 }
 0x26c   : > { %2577 = vst.msk [vmem:[%s4403_s30 + $0x80] sm:$0xff] %vm1955_vm3, %v2483_v42 }
 0x279   : > { %v2886_v57 = vpop.f32.mrb[12].mxu1 }
 0x27a   : > { %v2498_v24 = vadd.f32 %v2886_v57, %v4398_v58  ;;  %v2492_v61 = vpop.f32.mrb[13].mxu1 }
 0x27b   : > { %v2493_v27 = vadd.f32 %v4398_v58, %v2492_v61 }
 0x27c   : > { %2580 = vst.msk [vmem:[%s4403_s30 + $0x98] sm:$0xff] %vm1955_vm3, %v2498_v24 }
 0x27d   : > { %2579 = vst.msk [vmem:[%s4403_s30 + $0x90] sm:$0xff] %vm1955_vm3, %v2493_v27 }
 0x28b   : > { %v2889_v22 = vpop.f32.mrb[14].mxu1 }
 0x28c   : > { %v2508_v37 = vadd.f32 %v2889_v22, %v4398_v58  ;;  %v2502_v9 = vpop.f32.mrb[15].mxu1 }
 0x28d   : > { %v2503_v10 = vadd.f32 %v4398_v58, %v2502_v9 }
 0x28e   : > { %2582 = vst.msk [vmem:[%s4403_s30 + $0xa8] sm:$0xff] %vm1955_vm3, %v2508_v37 }
 0x28f   : > { %2581 = vst.msk [vmem:[%s4403_s30 + $0xa0] sm:$0xff] %vm1955_vm3, %v2503_v10 }
 0x29c   : > { %v2892_v11 = vpop.f32.mrb[16].mxu1 }
 0x29d   : > { %v2518_v15 = vadd.f32 %v2892_v11, %v4398_v58  ;;  %v2512_v47 = vpop.f32.mrb[17].mxu1 }
 0x29e   : > { %v2513_v16 = vadd.f32 %v4398_v58, %v2512_v47 }
 0x29f   : > { %2584 = vst.msk [vmem:[%s4403_s30 + $0xb8] sm:$0xff] %vm1955_vm3, %v2518_v15 }
 0x2a0   : > { %2583 = vst.msk [vmem:[%s4403_s30 + $0xb0] sm:$0xff] %vm1955_vm3, %v2513_v16 }
 0x2ae   : > { %v2895_v31 = vpop.f32.mrb[18].mxu1 }
 0x2af   : > { %v2528_v28 = vadd.f32 %v2895_v31, %v4398_v58  ;;  %v2522_v4 = vpop.f32.mrb[19].mxu1 }
 0x2b0   : > { %v2523_v1 = vadd.f32 %v4398_v58, %v2522_v4 }
 0x2b1   : > { %2586 = vst.msk [vmem:[%s4403_s30 + $0xc8] sm:$0xff] %vm1955_vm3, %v2528_v28 }
 0x2b2   : > { %2585 = vst.msk [vmem:[%s4403_s30 + $0xc0] sm:$0xff] %vm1955_vm3, %v2523_v1 }
 0x2bf   : > { %v2898_v62 = vpop.f32.mrb[20].mxu1 }
 0x2c0   : > { %v2538_v2 = vadd.f32 %v2898_v62, %v4398_v58  ;;  %v2532_v34 = vpop.f32.mrb[21].mxu1 }
 0x2c1   : > { %v2533_v63 = vadd.f32 %v4398_v58, %v2532_v34 }
 0x2c2   : > { %2588 = vst.msk [vmem:[%s4403_s30 + $0xd8] sm:$0xff] %vm1955_vm3, %v2538_v2 }
 0x2c3   : > { %2587 = vst.msk [vmem:[%s4403_s30 + $0xd0] sm:$0xff] %vm1955_vm3, %v2533_v63 }
 0x2d1   : > { %v2901_v7 = vpop.f32.mrb[22].mxu1 }
 0x2d2   : > { %v2548_v25 = vadd.f32 %v2901_v7, %v4398_v58  ;;  %v2542_v5 = vpop.f32.mrb[23].mxu1 }
 0x2d3   : > { %v2543_v20 = vadd.f32 %v4398_v58, %v2542_v5 }
 0x2d4   : > { %2590 = vst.msk [vmem:[%s4403_s30 + $0xe8] sm:$0xff] %vm1955_vm3, %v2548_v25 }
 0x2d5   : > { %2589 = vst.msk [vmem:[%s4403_s30 + $0xe0] sm:$0xff] %vm1955_vm3, %v2543_v20 }
 0x2e2   : > { %v2904_v30 = vpop.f32.mrb[24].mxu1 }
 0x2e3   : > { %v2558_v48 = vadd.f32 %v2904_v30, %v4398_v58  ;;  %v2552_v55 = vpop.f32.mrb[25].mxu1 }
 0x2e4   : > { %v2553_v53 = vadd.f32 %v4398_v58, %v2552_v55 }
 0x2e5   : > { %2592 = vst.msk [vmem:[%s4403_s30 + $0xf8] sm:$0xff] %vm1955_vm3, %v2558_v48 }
 0x2e6   : > { %2591 = vst.msk [vmem:[%s4403_s30 + $0xf0] sm:$0xff] %vm1955_vm3, %v2553_v53 }
 0x2e7 PF: > { %s16_s21 = sadd.s32 1, %s2968_s21  }
 0x2e8   : > { %p13_p4 = scmp.ge.s32.totalorder %s16_s21, 4  }
 0x2ea   :  { %15 = sbr.rel (!%p13_p4) target bundleno = 1 (0x1), region = 74 }

</bundles_post_ra>
